<compile_context>
chip_gen: v7x
topology: tpu7x:2x2x1
jax: 0.10.0
libtpu: 0.0.40
codegen_flags: <defaults>
</compile_context>

<pallas_src>
import functools

import jax
import jax.numpy as jnp
from jax import lax
from jax.experimental import pallas as pl
from jax.experimental.pallas import tpu as pltpu

NEG = -1e30                    # bias for padded vocab lanes
DECODE_STEPS_PER_BLOCK = 8     # K greedy steps per decode grid iteration
VMEM_LIMIT = 64 * 1024 * 1024


def _round_up(x, m):
    return ((x + m - 1) // m) * m


def _pad2(a, r, c):
    return jnp.pad(a, ((0, r - a.shape[0]), (0, c - a.shape[1])))


def _fuse_gate_w(w4, in_p, out_p):
    # (4, In, Out) -> (in_p, 4*out_p), zero padded PER GATE
    w4p = jnp.pad(w4, ((0, 0), (0, in_p - w4.shape[1]), (0, out_p - w4.shape[2])))
    return jnp.transpose(w4p, (1, 0, 2)).reshape(in_p, 4 * out_p)


def _fuse_gate_b(b4, out_p):
    b4p = jnp.pad(b4, ((0, 0), (0, out_p - b4.shape[1])))
    return b4p.reshape(1, 4 * out_p)


# -----------------------------------------------------------------------------
# Kernel 1: TranscriptionNet LSTM + join-side projection.
#   - input projection for the WHOLE time block is hoisted out of the recurrence
#   - the serial fori_loop only does h @ Whh + elementwise (partial unroll)
#   - after the loop, the block of hidden states is projected by j_wf once
#     (full-M MXU matmul) so the decode kernel only needs the projected rows.
# -----------------------------------------------------------------------------
def _transnet_kernel(x_ref, wih_ref, whh_ref, b_ref, jwf_ref, fyw_ref,
                     h_sc, c_sc, xg_sc, hblk_sc):
    @pl.when(pl.program_id(0) == 0)
    def _():
        h_sc[...] = jnp.zeros_like(h_sc)
        c_sc[...] = jnp.zeros_like(c_sc)

    t_blk, Bp, Fp = x_ref.shape
    Htp = whh_ref.shape[0]

    # Hoisted input projection (+ bias) for the whole block: M = t_blk*Bp.
    xg = (jnp.dot(x_ref[...].reshape(t_blk * Bp, Fp), wih_ref[...],
                  preferred_element_type=jnp.float32) + b_ref[...])
    xg_sc[...] = xg.reshape(t_blk, Bp, 4 * Htp)

    whh = whh_ref[...]

    def step(t, carry):
        h, c = carry
        gates = xg_sc[t] + jnp.dot(h, whh, preferred_element_type=jnp.float32)
        i_g = jax.nn.sigmoid(gates[:, 0:Htp])
        f_g = jax.nn.sigmoid(gates[:, Htp:2 * Htp])
        g_g = jnp.tanh(gates[:, 2 * Htp:3 * Htp])
        o_g = jax.nn.sigmoid(gates[:, 3 * Htp:4 * Htp])
        c_new = f_g * c + i_g * g_g
        h_new = o_g * jnp.tanh(c_new)
        hblk_sc[t] = h_new
        return (h_new, c_new)

    # Partial unroll keeps LLO visibility without blowing the vreg budget.
    h_fin, c_fin = lax.fori_loop(0, t_blk, step, (h_sc[...], c_sc[...]), unroll=8)
    h_sc[...] = h_fin
    c_sc[...] = c_fin

    # Join-side projection of the whole block, off the serial path.
    fyw = jnp.dot(hblk_sc[...].reshape(t_blk * Bp, Htp), jwf_ref[...],
                  preferred_element_type=jnp.float32)
    fyw_ref[...] = fyw.reshape(t_blk, Bp, fyw_ref.shape[2])


def run_transnet(x_tm, wih, whh, b, jwf, *, t_blk):
    # x_tm: (Tp, Bp, Fp) time-major, padded.  Returns (Tp, Bp, Hjp) = trans @ j_wf.
    Tp, Bp, Fp = x_tm.shape
    Htp = whh.shape[0]
    Hjp = jwf.shape[1]
    grid_spec = pltpu.PrefetchScalarGridSpec(
        num_scalar_prefetch=0,
        grid=(Tp // t_blk,),
        in_specs=[
            pl.BlockSpec((t_blk, Bp, Fp), lambda k: (k, 0, 0)),
            pl.BlockSpec((Fp, 4 * Htp), lambda k: (0, 0)),
            pl.BlockSpec((Htp, 4 * Htp), lambda k: (0, 0)),
            pl.BlockSpec((1, 4 * Htp), lambda k: (0, 0)),
            pl.BlockSpec((Htp, Hjp), lambda k: (0, 0)),
        ],
        out_specs=pl.BlockSpec((t_blk, Bp, Hjp), lambda k: (k, 0, 0)),
        scratch_shapes=[pltpu.VMEM((Bp, Htp), jnp.float32),            # h
                        pltpu.VMEM((Bp, Htp), jnp.float32),            # c
                        pltpu.VMEM((t_blk, Bp, 4 * Htp), jnp.float32),  # hoisted x@Wih
                        pltpu.VMEM((t_blk, Bp, Htp), jnp.float32)],     # block hiddens
    )
    return pl.pallas_call(
        _transnet_kernel,
        out_shape=jax.ShapeDtypeStruct((Tp, Bp, Hjp), jnp.float32),
        grid_spec=grid_spec,
        compiler_params=pltpu.CompilerParams(dimension_semantics=("arbitrary",),
                                             vmem_limit_bytes=VMEM_LIMIT),
    )(x_tm, wih, whh, b, jwf)


# -----------------------------------------------------------------------------
# Kernel 2: the ENTIRE greedy decode loop.  Grid = (max_length_padded / K,).
# Weights are resident (constant index maps).  Per step:
#   - gather the pre-folded embedding-gate row (embW[gu]) and the pre-projected
#     encoder row (fyW[cnt*Bp+b]) with SMEM-scalar dynamic row loads,
#   - fused-gate LSTMCell, JoinNet + log_softmax, greedy bookkeeping,
#   - hand next-step indices + per-row "done" to SMEM via a tiny DMA.
# Once every real row terminated, whole subsequent blocks are skipped (pl.when).
# -----------------------------------------------------------------------------
def _decode_kernel(fyw_ref, embw_ref, p_whh_ref, p_b_ref,
                   j_wp_ref, j_b1_ref, j_w2_ref, j_b2_ref,
                   preds_ref, term_ref,
                   h_sc, c_sc, gu_sc, cnt_sc, eg_sc, fy_sc, stage_sc, idx_sm, dma_sem,
                   *, sos_idx, phi_idx, ceil_idx, k_steps, real_b, max_length):
    tb = pl.program_id(0)
    Bp, Hpp = h_sc.shape
    Vp = j_w2_ref.shape[1]

    @pl.when(tb == 0)
    def _():
        h_sc[...] = jnp.zeros_like(h_sc)
        c_sc[...] = jnp.zeros_like(c_sc)
        gu_sc[...] = jnp.full(gu_sc.shape, sos_idx, dtype=jnp.int32)
        cnt_sc[...] = jnp.zeros_like(cnt_sc)
        term_ref[...] = jnp.zeros_like(term_ref)
        for b in range(Bp):
            idx_sm[b, 0] = jnp.int32(sos_idx)   # last emitted non-phi token (gu)
            idx_sm[b, 1] = jnp.int32(b)         # encoder row = cnt*Bp + b, cnt=0
            idx_sm[b, 2] = jnp.int32(0)         # per-row "terminated" flag

    # Early-exit guard: skip the whole block once every REAL row has terminated.
    done_sum = idx_sm[0, 2]
    for b in range(1, Bp):
        done_sum = done_sum + idx_sm[b, 2]
    not_done = done_sum < Bp

    @pl.when(not_done)
    def _():
        def step(k, carry):
            # ---- SMEM-driven row gathers (indices produced by the previous step)
            for b in range(Bp):
                g = idx_sm[b, 0]
                r = idx_sm[b, 1]
                eg_sc[pl.ds(b, 1), :] = embw_ref[pl.ds(g, 1), :]
                fy_sc[pl.ds(b, 1), :] = fyw_ref[pl.ds(r, 1), :]

            # ---- PredictNet LSTMCell (embedding already folded into eg rows)
            h = h_sc[...]
            c = c_sc[...]
            gates = (eg_sc[...]
                     + jnp.dot(h, p_whh_ref[...], preferred_element_type=jnp.float32)
                     + p_b_ref[...])                                     # (Bp, 4*Hpp)
            i_g = jax.nn.sigmoid(gates[:, 0:Hpp])
            f_g = jax.nn.sigmoid(gates[:, Hpp:2 * Hpp])
            g_g = jnp.tanh(gates[:, 2 * Hpp:3 * Hpp])
            o_g = jax.nn.sigmoid(gates[:, 3 * Hpp:4 * Hpp])
            c_new = f_g * c + i_g * g_g
            h_new = o_g * jnp.tanh(c_new)
            h_sc[...] = h_new
            c_sc[...] = c_new

            # ---- JoinNet (encoder side already projected by j_wf in kernel 1)
            z = jnp.tanh(fy_sc[...]
                         + jnp.dot(h_new, j_wp_ref[...], preferred_element_type=jnp.float32)
                         + j_b1_ref[...])
            logits = (jnp.dot(z, j_w2_ref[...], preferred_element_type=jnp.float32)
                      + j_b2_ref[...])        # padded vocab lanes carry -1e30 bias

            # log_softmax (padded lanes contribute exp(-1e30) == 0)
            m = jnp.max(logits, axis=-1, keepdims=True)
            s = logits - m
            lse = jnp.log(jnp.sum(jnp.exp(s), axis=-1, keepdims=True))
            preds_ref[k] = s - lse

            # ---- greedy bookkeeping.  NOTE: the counter is incremented by
            # (UPDATED gu == phi), exactly as in the reference update_states().
            v_iota = lax.broadcasted_iota(jnp.int32, (Bp, Vp), 1)
            am = jnp.min(jnp.where(logits == m, v_iota, Vp), axis=-1, keepdims=True)
            gu = gu_sc[...]
            cnt = cnt_sc[...]
            is_phi = am == phi_idx
            gu_new = jnp.where(is_phi, gu, am)
            cnt_new = cnt + (gu_new == phi_idx).astype(jnp.int32)
            update_mask = cnt_new >= ceil_idx
            cnt_clip = jnp.minimum(cnt_new, ceil_idx)
            gu_sc[...] = gu_new
            cnt_sc[...] = cnt_clip

            t_global = tb * k_steps + k                  # 0-based global step
            in_range = t_global < max_length             # padded steps never update term
            step_val = (t_global + 1).astype(jnp.float32)
            term = term_ref[...]
            upd = (term == 0.0) & update_mask & in_range
            term_new = term + jnp.where(upd, step_val, 0.0)
            term_ref[...] = term_new

            # ---- hand next-step scalar indices (and per-row done) to SMEM
            row_iota = lax.broadcasted_iota(jnp.int32, (Bp, 1), 0)
            fy_row = cnt_clip * Bp + row_iota
            done_row = ((term_new > 0.0) | (row_iota >= real_b)).astype(jnp.int32)
            lane = lax.broadcasted_iota(jnp.int32, (Bp, 128), 1)
            stage = (jnp.where(lane == 0, gu_new, 0)
                     + jnp.where(lane == 1, fy_row, 0)
                     + jnp.where(lane == 2, done_row, 0))
            stage_sc[...] = stage
            cp = pltpu.make_async_copy(stage_sc, idx_sm, dma_sem)
            cp.start()
            cp.wait()
            return carry

        lax.fori_loop(0, k_steps, step, 0, unroll=True)


# -----------------------------------------------------------------------------
# Model wrapper
# -----------------------------------------------------------------------------
class PallasRNNTModel:
    def __init__(self, key, *, feat, trans_hidden, embed, pred_hidden,
                 join_hidden, vocab, phi_idx, pad_idx, sos_idx):
        self.phi_idx, self.pad_idx, self.sos_idx = phi_idx, pad_idx, sos_idx
        self.F, self.Ht, self.E, self.Hp, self.Hj, self.V = (
            feat, trans_hidden, embed, pred_hidden, join_hidden, vocab)

        # lane-padded sizes (multiples of 128)
        self.Fp = _round_up(feat, 128)
        self.Htp = _round_up(trans_hidden, 128)
        self.Ep = _round_up(embed, 128)
        self.Hpp = _round_up(pred_hidden, 128)
        self.Hjp = _round_up(join_hidden, 128)
        self.Vp = _round_up(vocab, 128)

        def uni(k, shape, fan_in):
            bound = 1.0 / float(fan_in) ** 0.5
            return jax.random.uniform(k, shape, jnp.float32, -bound, bound)

        ks = jax.random.split(key, 12)
        # TranscriptionNet LSTM (fused gate layout, one-time host reshape/pad)
        t_wih4 = uni(ks[0], (4, feat, trans_hidden), feat)
        t_whh4 = uni(ks[1], (4, trans_hidden, trans_hidden), trans_hidden)
        t_b4 = uni(ks[2], (4, trans_hidden), trans_hidden)
        self.t_wih = _fuse_gate_w(t_wih4, self.Fp, self.Htp)      # (Fp, 4*Htp)
        self.t_whh = _fuse_gate_w(t_whh4, self.Htp, self.Htp)     # (Htp, 4*Htp)
        self.t_b = _fuse_gate_b(t_b4, self.Htp)                   # (1, 4*Htp)

        # PredictNet: embedding + LSTMCell, with the embedding lookup pre-folded
        # into the gate projection:  embW = emb @ Wih  ->  (Vp, 4*Hpp)
        emb = uni(ks[3], (vocab, embed), embed)
        emb_p = _pad2(emb, self.Vp, self.Ep)                      # (Vp, Ep)
        p_wih4 = uni(ks[4], (4, embed, pred_hidden), embed)
        p_whh4 = uni(ks[5], (4, pred_hidden, pred_hidden), pred_hidden)
        p_b4 = uni(ks[6], (4, pred_hidden), pred_hidden)
        p_wih = _fuse_gate_w(p_wih4, self.Ep, self.Hpp)           # (Ep, 4*Hpp)
        self.embw = jnp.dot(emb_p, p_wih)                         # (Vp, 4*Hpp)
        self.p_whh = _fuse_gate_w(p_whh4, self.Hpp, self.Hpp)
        self.p_b = _fuse_gate_b(p_b4, self.Hpp)

        # JoinNet
        fan = trans_hidden + pred_hidden
        j_wf = uni(ks[7], (trans_hidden, join_hidden), fan)
        j_wp = uni(ks[8], (pred_hidden, join_hidden), fan)
        j_b1 = uni(ks[9], (1, join_hidden), fan)
        j_w2 = uni(ks[10], (join_hidden, vocab), join_hidden)
        j_b2 = uni(ks[11], (1, vocab), join_hidden)
        self.j_wf = _pad2(j_wf, self.Htp, self.Hjp)               # used inside transnet kernel
        self.j_wp = _pad2(j_wp, self.Hpp, self.Hjp)
        self.j_b1 = _pad2(j_b1, 1, self.Hjp)
        self.j_w2 = _pad2(j_w2, self.Hjp, self.Vp)
        self.j_b2 = jnp.full((1, self.Vp), NEG, jnp.float32).at[:, :vocab].set(j_b2)

    def _make_decoder(self, Bp, TBp, ml_pad, k_steps, ceil_idx, real_b, max_length):
        kernel = functools.partial(_decode_kernel, sos_idx=self.sos_idx,
                                   phi_idx=self.phi_idx, ceil_idx=ceil_idx,
                                   k_steps=k_steps, real_b=real_b,
                                   max_length=max_length)
        Vp, Hpp, Hjp = self.Vp, self.Hpp, self.Hjp
        const = lambda t: (0, 0)
        grid_spec = pltpu.PrefetchScalarGridSpec(
            num_scalar_prefetch=0,
            grid=(ml_pad // k_steps,),
            in_specs=[
                pl.BlockSpec((TBp, Hjp), const),       # pre-projected encoder rows (resident)
                pl.BlockSpec((Vp, 4 * Hpp), const),    # embedding folded into gates
                pl.BlockSpec((Hpp, 4 * Hpp), const),   # prednet fused Whh
                pl.BlockSpec((1, 4 * Hpp), const),     # prednet fused bias
                pl.BlockSpec((Hpp, Hjp), const),       # join W1 (prednet-out part)
                pl.BlockSpec((1, Hjp), const),         # join b1
                pl.BlockSpec((Hjp, Vp), const),        # join W2
                pl.BlockSpec((1, Vp), const),          # join b2 (padded lanes = -1e30)
            ],
            out_specs=[
                pl.BlockSpec((k_steps, Bp, Vp), lambda t: (t, 0, 0)),  # preds per block
                pl.BlockSpec((Bp, 1), const),                          # term_state (resident)
            ],
            scratch_shapes=[
                pltpu.VMEM((Bp, Hpp), jnp.float32),    # h
                pltpu.VMEM((Bp, Hpp), jnp.float32),    # c
                pltpu.VMEM((Bp, 1), jnp.int32),        # gu (vector bookkeeping)
                pltpu.VMEM((Bp, 1), jnp.int32),        # counter (vector bookkeeping)
                pltpu.VMEM((Bp, 4 * Hpp), jnp.float32),  # gathered embedding-gate rows
                pltpu.VMEM((Bp, Hjp), jnp.float32),      # gathered encoder rows
                pltpu.VMEM((Bp, 128), jnp.int32),        # staging for VMEM->SMEM handoff
                pltpu.SMEM((Bp, 128), jnp.int32),        # per-row scalar indices / done flag
                pltpu.SemaphoreType.DMA(()),
            ],
        )
        return pl.pallas_call(
            kernel,
            out_shape=(jax.ShapeDtypeStruct((ml_pad, Bp, Vp), jnp.float32),
                       jax.ShapeDtypeStruct((Bp, 1), jnp.float32)),
            grid_spec=grid_spec,
            compiler_params=pltpu.CompilerParams(dimension_semantics=("arbitrary",),
                                                 vmem_limit_bytes=VMEM_LIMIT),
        )

    def forward(self, x, max_length):
        B, T, F = x.shape
        assert F == self.F
        Bp = _round_up(B, 8)
        t_blk = min(128, _round_up(T, 8))
        Tp = _round_up(T, t_blk)

        # pad to 8x128 tiles; time-major for the recurrent kernel (single cheap pass)
        x_p = jnp.pad(x.astype(jnp.float32),
                      ((0, Bp - B), (0, Tp - T), (0, self.Fp - F)))
        x_tm = jnp.transpose(x_p, (1, 0, 2))                         # (Tp, Bp, Fp)

        # Transcription LSTM + join-side projection (trans @ j_wf) in one kernel.
        fyw_tm = run_transnet(x_tm, self.t_wih, self.t_whh, self.t_b, self.j_wf,
                              t_blk=t_blk)                           # (Tp, Bp, Hjp)
        fyw_flat = fyw_tm.reshape(Tp * Bp, self.Hjp)                 # row = t*Bp + b

        K = DECODE_STEPS_PER_BLOCK
        ml_pad = _round_up(max_length, K)
        decoder = self._make_decoder(Bp, Tp * Bp, ml_pad, K,
                                     ceil_idx=T - 1, real_b=B, max_length=max_length)
        preds_all, term_p = decoder(fyw_flat, self.embw,
                                    self.p_whh, self.p_b,
                                    self.j_wp, self.j_b1, self.j_w2, self.j_b2)

        term_state = term_p[:B, 0]                                   # (B,) f32

        # single host read replaces the per-step `update_mask.sum().item()` break:
        # the reference loop stops at the first step where all rows terminated.
        term_host = jax.device_get(term_state)
        if (term_host > 0).all():
            t_break = int(term_host.max())
        else:
            t_break = max_length

        result = jnp.transpose(preds_all, (1, 0, 2))[:B, :t_break, :self.V]
        return result, term_state


# -----------------------------------------------------------------------------
if __name__ == "__main__":
    B, T, F = 2, 8, 16
    Ht, E, Hp, Hj, V = 32, 16, 32, 32, 20
    phi_idx, pad_idx, sos_idx = V - 1, 0, 1
    max_length = 10

    key = jax.random.PRNGKey(0)
    k_param, k_x = jax.random.split(key)
    x = jax.random.normal(k_x, (B, T, F), jnp.float32)

    model = PallasRNNTModel(k_param, feat=F, trans_hidden=Ht, embed=E,
                            pred_hidden=Hp, join_hidden=Hj, vocab=V,
                            phi_idx=phi_idx, pad_idx=pad_idx, sos_idx=sos_idx)

    result, term_state = model.forward(x, max_length)
    jax.block_until_ready((result, term_state))
    assert result.shape[0] == B and result.shape[2] == V
    assert term_state.shape == (B,)
    assert bool(jnp.all(jnp.isfinite(result)))
    print("KERNEL_OK")
</pallas_src>

<mosaic_0001>
module attributes {stable_mosaic.version = 11 : i64} {
  func.func @_transnet_kernel(%arg0: i32, %arg1: memref<8x8x128xf32, #tpu.memory_space<vmem>>, %arg2: memref<128x512xf32, #tpu.memory_space<vmem>>, %arg3: memref<128x512xf32, #tpu.memory_space<vmem>>, %arg4: memref<1x512xf32, #tpu.memory_space<vmem>>, %arg5: memref<128x128xf32, #tpu.memory_space<vmem>>, %arg6: memref<8x8x128xf32, #tpu.memory_space<vmem>>, %arg7: memref<8x128xf32, #tpu.memory_space<vmem>>, %arg8: memref<8x128xf32, #tpu.memory_space<vmem>>, %arg9: memref<8x8x512xf32, #tpu.memory_space<vmem>>, %arg10: memref<8x8x128xf32, #tpu.memory_space<vmem>>) attributes {dimension_semantics = [#tpu.dimension_semantics<arbitrary>], iteration_bounds = array<i64: 1>, scalar_prefetch = 0 : i64, scratch_operands = 4 : i64, tpu.core_type = #tpu.core_type<tc>, window_params = [{transform_indices = @transform_0, window_bounds = array<i64: 8, 8, 128>}, {pipeline_mode = #tpu.pipeline_mode<synchronous>, transform_indices = @transform_1, window_bounds = array<i64: 128, 512>}, {pipeline_mode = #tpu.pipeline_mode<synchronous>, transform_indices = @transform_2, window_bounds = array<i64: 128, 512>}, {pipeline_mode = #tpu.pipeline_mode<synchronous>, transform_indices = @transform_3, window_bounds = array<i64: 1, 512>}, {pipeline_mode = #tpu.pipeline_mode<synchronous>, transform_indices = @transform_4, window_bounds = array<i64: 128, 128>}, {transform_indices = @transform_5, window_bounds = array<i64: 8, 8, 128>}]} {
    %c0_i32 = arith.constant 0 : i32
    %0 = arith.cmpi eq, %arg0, %c0_i32 : i32
    %1 = arith.extui %0 : i1 to i32
    %c0_i32_0 = arith.constant 0 : i32
    %2 = arith.cmpi ne, %1, %c0_i32_0 : i32
    scf.if %2 {
      %cst_94 = arith.constant 0.000000e+00 : f32
      %295 = vector.broadcast %cst_94 : f32 to vector<8x128xf32>
      %c0_95 = arith.constant 0 : index
      %c0_96 = arith.constant 0 : index
      %296 = vector.load %arg7[%c0_95, %c0_96] : memref<8x128xf32, #tpu.memory_space<vmem>>, vector<8x128xf32>
      tpu.vector_store %arg7[%c0_95, %c0_96], %295 {strides = array<i32>} : memref<8x128xf32, #tpu.memory_space<vmem>>, vector<8x128xf32>,
      %cst_97 = arith.constant 0.000000e+00 : f32
      %297 = vector.broadcast %cst_97 : f32 to vector<8x128xf32>
      %c0_98 = arith.constant 0 : index
      %c0_99 = arith.constant 0 : index
      %298 = vector.load %arg8[%c0_98, %c0_99] : memref<8x128xf32, #tpu.memory_space<vmem>>, vector<8x128xf32>
      tpu.vector_store %arg8[%c0_98, %c0_99], %297 {strides = array<i32>} : memref<8x128xf32, #tpu.memory_space<vmem>>, vector<8x128xf32>,
    } else {
    }
    %c0 = arith.constant 0 : index
    %c0_1 = arith.constant 0 : index
    %c0_2 = arith.constant 0 : index
    %3 = vector.load %arg1[%c0, %c0_1, %c0_2] : memref<8x8x128xf32, #tpu.memory_space<vmem>>, vector<8x8x128xf32>
    %4 = vector.shape_cast %3 : vector<8x8x128xf32> to vector<64x128xf32>
    %c0_3 = arith.constant 0 : index
    %c0_4 = arith.constant 0 : index
    %5 = vector.load %arg2[%c0_3, %c0_4] : memref<128x512xf32, #tpu.memory_space<vmem>>, vector<128x512xf32>
    %cst = arith.constant dense<0.000000e+00> : vector<64x512xf32>
    %6 = tpu.matmul %4, %5, %cst {dimension_numbers = #tpu.dot_dimension_numbers<[1], [0], [0], [1], [0, 0, 1, 1], [], []>} : vector<64x128xf32>, vector<128x512xf32>, vector<64x512xf32> -> vector<64x512xf32>
    %c0_5 = arith.constant 0 : index
    %c0_6 = arith.constant 0 : index
    %7 = vector.load %arg4[%c0_5, %c0_6] : memref<1x512xf32, #tpu.memory_space<vmem>>, vector<1x512xf32>
    %8 = vector.broadcast %7 : vector<1x512xf32> to vector<64x512xf32>
    %9 = arith.addf %6, %8 : vector<64x512xf32>
    %10 = vector.shape_cast %9 : vector<64x512xf32> to vector<8x8x512xf32>
    %c0_7 = arith.constant 0 : index
    %c0_8 = arith.constant 0 : index
    %c0_9 = arith.constant 0 : index
    %11 = vector.load %arg9[%c0_7, %c0_8, %c0_9] : memref<8x8x512xf32, #tpu.memory_space<vmem>>, vector<8x8x512xf32>
    tpu.vector_store %arg9[%c0_7, %c0_8, %c0_9], %10 {strides = array<i32>} : memref<8x8x512xf32, #tpu.memory_space<vmem>>, vector<8x8x512xf32>,
    %c0_10 = arith.constant 0 : index
    %c0_11 = arith.constant 0 : index
    %12 = vector.load %arg3[%c0_10, %c0_11] : memref<128x512xf32, #tpu.memory_space<vmem>>, vector<128x512xf32>
    %c0_12 = arith.constant 0 : index
    %c0_13 = arith.constant 0 : index
    %13 = vector.load %arg7[%c0_12, %c0_13] : memref<8x128xf32, #tpu.memory_space<vmem>>, vector<8x128xf32>
    %c0_14 = arith.constant 0 : index
    %c0_15 = arith.constant 0 : index
    %14 = vector.load %arg8[%c0_14, %c0_15] : memref<8x128xf32, #tpu.memory_space<vmem>>, vector<8x128xf32>
    %c0_i32_16 = arith.constant 0 : i32
    %15 = arith.index_cast %c0_i32_16 : i32 to index
    %c0_17 = arith.constant 0 : index
    %c0_18 = arith.constant 0 : index
    %16 = vector.load %arg9[%15, %c0_17, %c0_18] : memref<8x8x512xf32, #tpu.memory_space<vmem>>, vector<1x8x512xf32>
    %17 = vector.shape_cast %16 : vector<1x8x512xf32> to vector<8x512xf32>
    %cst_19 = arith.constant dense<0.000000e+00> : vector<8x512xf32>
    %18 = tpu.matmul %13, %12, %cst_19 {dimension_numbers = #tpu.dot_dimension_numbers<[1], [0], [0], [1], [0, 0, 1, 1], [], []>} : vector<8x128xf32>, vector<128x512xf32>, vector<8x512xf32> -> vector<8x512xf32>
    %19 = arith.addf %17, %18 : vector<8x512xf32>
    %20 = vector.extract_strided_slice %19 {offsets = [0, 0], sizes = [8, 128], strides = [1, 1]} : vector<8x512xf32> to vector<8x128xf32>
    %21 = arith.negf %20 : vector<8x128xf32>
    %22 = math.exp %21 : vector<8x128xf32>
    %cst_20 = arith.constant 1.000000e+00 : f32
    %23 = vector.broadcast %cst_20 : f32 to vector<8x128xf32>
    %24 = arith.addf %23, %22 : vector<8x128xf32>
    %25 = arith.divf %23, %24 : vector<8x128xf32>
    %26 = vector.extract_strided_slice %19 {offsets = [0, 128], sizes = [8, 128], strides = [1, 1]} : vector<8x512xf32> to vector<8x128xf32>
    %27 = arith.negf %26 : vector<8x128xf32>
    %28 = math.exp %27 : vector<8x128xf32>
    %cst_21 = arith.constant 1.000000e+00 : f32
    %29 = vector.broadcast %cst_21 : f32 to vector<8x128xf32>
    %30 = arith.addf %29, %28 : vector<8x128xf32>
    %31 = arith.divf %29, %30 : vector<8x128xf32>
    %32 = vector.extract_strided_slice %19 {offsets = [0, 256], sizes = [8, 128], strides = [1, 1]} : vector<8x512xf32> to vector<8x128xf32>
    %33 = math.tanh %32 : vector<8x128xf32>
    %34 = vector.extract_strided_slice %19 {offsets = [0, 384], sizes = [8, 128], strides = [1, 1]} : vector<8x512xf32> to vector<8x128xf32>
    %35 = arith.negf %34 : vector<8x128xf32>
    %36 = math.exp %35 : vector<8x128xf32>
    %cst_22 = arith.constant 1.000000e+00 : f32
    %37 = vector.broadcast %cst_22 : f32 to vector<8x128xf32>
    %38 = arith.addf %37, %36 : vector<8x128xf32>
    %39 = arith.divf %37, %38 : vector<8x128xf32>
    %40 = arith.mulf %31, %14 : vector<8x128xf32>
    %41 = arith.mulf %25, %33 : vector<8x128xf32>
    %42 = arith.addf %40, %41 : vector<8x128xf32>
    %43 = math.tanh %42 : vector<8x128xf32>
    %44 = arith.mulf %39, %43 : vector<8x128xf32>
    %45 = arith.index_cast %c0_i32_16 : i32 to index
    %c0_23 = arith.constant 0 : index
    %c0_24 = arith.constant 0 : index
    %46 = vector.load %arg10[%45, %c0_23, %c0_24] : memref<8x8x128xf32, #tpu.memory_space<vmem>>, vector<1x8x128xf32>
    %47 = vector.shape_cast %46 : vector<1x8x128xf32> to vector<8x128xf32>
    %48 = vector.shape_cast %44 : vector<8x128xf32> to vector<1x8x128xf32>
    tpu.vector_store %arg10[%45, %c0_23, %c0_24], %48 {strides = array<i32>} : memref<8x8x128xf32, #tpu.memory_space<vmem>>, vector<1x8x128xf32>,
    %c1_i32 = arith.constant 1 : i32
    %49 = arith.index_cast %c1_i32 : i32 to index
    %c0_25 = arith.constant 0 : index
    %c0_26 = arith.constant 0 : index
    %50 = vector.load %arg9[%49, %c0_25, %c0_26] : memref<8x8x512xf32, #tpu.memory_space<vmem>>, vector<1x8x512xf32>
    %51 = vector.shape_cast %50 : vector<1x8x512xf32> to vector<8x512xf32>
    %cst_27 = arith.constant dense<0.000000e+00> : vector<8x512xf32>
    %52 = tpu.matmul %44, %12, %cst_27 {dimension_numbers = #tpu.dot_dimension_numbers<[1], [0], [0], [1], [0, 0, 1, 1], [], []>} : vector<8x128xf32>, vector<128x512xf32>, vector<8x512xf32> -> vector<8x512xf32>
    %53 = arith.addf %51, %52 : vector<8x512xf32>
    %54 = vector.extract_strided_slice %53 {offsets = [0, 0], sizes = [8, 128], strides = [1, 1]} : vector<8x512xf32> to vector<8x128xf32>
    %55 = arith.negf %54 : vector<8x128xf32>
    %56 = math.exp %55 : vector<8x128xf32>
    %cst_28 = arith.constant 1.000000e+00 : f32
    %57 = vector.broadcast %cst_28 : f32 to vector<8x128xf32>
    %58 = arith.addf %57, %56 : vector<8x128xf32>
    %59 = arith.divf %57, %58 : vector<8x128xf32>
    %60 = vector.extract_strided_slice %53 {offsets = [0, 128], sizes = [8, 128], strides = [1, 1]} : vector<8x512xf32> to vector<8x128xf32>
    %61 = arith.negf %60 : vector<8x128xf32>
    %62 = math.exp %61 : vector<8x128xf32>
    %cst_29 = arith.constant 1.000000e+00 : f32
    %63 = vector.broadcast %cst_29 : f32 to vector<8x128xf32>
    %64 = arith.addf %63, %62 : vector<8x128xf32>
    %65 = arith.divf %63, %64 : vector<8x128xf32>
    %66 = vector.extract_strided_slice %53 {offsets = [0, 256], sizes = [8, 128], strides = [1, 1]} : vector<8x512xf32> to vector<8x128xf32>
    %67 = math.tanh %66 : vector<8x128xf32>
    %68 = vector.extract_strided_slice %53 {offsets = [0, 384], sizes = [8, 128], strides = [1, 1]} : vector<8x512xf32> to vector<8x128xf32>
    %69 = arith.negf %68 : vector<8x128xf32>
    %70 = math.exp %69 : vector<8x128xf32>
    %cst_30 = arith.constant 1.000000e+00 : f32
    %71 = vector.broadcast %cst_30 : f32 to vector<8x128xf32>
    %72 = arith.addf %71, %70 : vector<8x128xf32>
    %73 = arith.divf %71, %72 : vector<8x128xf32>
    %74 = arith.mulf %65, %42 : vector<8x128xf32>
    %75 = arith.mulf %59, %67 : vector<8x128xf32>
    %76 = arith.addf %74, %75 : vector<8x128xf32>
    %77 = math.tanh %76 : vector<8x128xf32>
    %78 = arith.mulf %73, %77 : vector<8x128xf32>
    %79 = arith.index_cast %c1_i32 : i32 to index
    %c0_31 = arith.constant 0 : index
    %c0_32 = arith.constant 0 : index
    %80 = vector.load %arg10[%79, %c0_31, %c0_32] : memref<8x8x128xf32, #tpu.memory_space<vmem>>, vector<1x8x128xf32>
    %81 = vector.shape_cast %80 : vector<1x8x128xf32> to vector<8x128xf32>
    %82 = vector.shape_cast %78 : vector<8x128xf32> to vector<1x8x128xf32>
    tpu.vector_store %arg10[%79, %c0_31, %c0_32], %82 {strides = array<i32>} : memref<8x8x128xf32, #tpu.memory_space<vmem>>, vector<1x8x128xf32>,
    %c2_i32 = arith.constant 2 : i32
    %83 = arith.index_cast %c2_i32 : i32 to index
    %c0_33 = arith.constant 0 : index
    %c0_34 = arith.constant 0 : index
    %84 = vector.load %arg9[%83, %c0_33, %c0_34] : memref<8x8x512xf32, #tpu.memory_space<vmem>>, vector<1x8x512xf32>
    %85 = vector.shape_cast %84 : vector<1x8x512xf32> to vector<8x512xf32>
    %cst_35 = arith.constant dense<0.000000e+00> : vector<8x512xf32>
    %86 = tpu.matmul %78, %12, %cst_35 {dimension_numbers = #tpu.dot_dimension_numbers<[1], [0], [0], [1], [0, 0, 1, 1], [], []>} : vector<8x128xf32>, vector<128x512xf32>, vector<8x512xf32> -> vector<8x512xf32>
    %87 = arith.addf %85, %86 : vector<8x512xf32>
    %88 = vector.extract_strided_slice %87 {offsets = [0, 0], sizes = [8, 128], strides = [1, 1]} : vector<8x512xf32> to vector<8x128xf32>
    %89 = arith.negf %88 : vector<8x128xf32>
    %90 = math.exp %89 : vector<8x128xf32>
    %cst_36 = arith.constant 1.000000e+00 : f32
    %91 = vector.broadcast %cst_36 : f32 to vector<8x128xf32>
    %92 = arith.addf %91, %90 : vector<8x128xf32>
    %93 = arith.divf %91, %92 : vector<8x128xf32>
    %94 = vector.extract_strided_slice %87 {offsets = [0, 128], sizes = [8, 128], strides = [1, 1]} : vector<8x512xf32> to vector<8x128xf32>
    %95 = arith.negf %94 : vector<8x128xf32>
    %96 = math.exp %95 : vector<8x128xf32>
    %cst_37 = arith.constant 1.000000e+00 : f32
    %97 = vector.broadcast %cst_37 : f32 to vector<8x128xf32>
    %98 = arith.addf %97, %96 : vector<8x128xf32>
    %99 = arith.divf %97, %98 : vector<8x128xf32>
    %100 = vector.extract_strided_slice %87 {offsets = [0, 256], sizes = [8, 128], strides = [1, 1]} : vector<8x512xf32> to vector<8x128xf32>
    %101 = math.tanh %100 : vector<8x128xf32>
    %102 = vector.extract_strided_slice %87 {offsets = [0, 384], sizes = [8, 128], strides = [1, 1]} : vector<8x512xf32> to vector<8x128xf32>
    %103 = arith.negf %102 : vector<8x128xf32>
    %104 = math.exp %103 : vector<8x128xf32>
    %cst_38 = arith.constant 1.000000e+00 : f32
    %105 = vector.broadcast %cst_38 : f32 to vector<8x128xf32>
    %106 = arith.addf %105, %104 : vector<8x128xf32>
    %107 = arith.divf %105, %106 : vector<8x128xf32>
    %108 = arith.mulf %99, %76 : vector<8x128xf32>
    %109 = arith.mulf %93, %101 : vector<8x128xf32>
    %110 = arith.addf %108, %109 : vector<8x128xf32>
    %111 = math.tanh %110 : vector<8x128xf32>
    %112 = arith.mulf %107, %111 : vector<8x128xf32>
    %113 = arith.index_cast %c2_i32 : i32 to index
    %c0_39 = arith.constant 0 : index
    %c0_40 = arith.constant 0 : index
    %114 = vector.load %arg10[%113, %c0_39, %c0_40] : memref<8x8x128xf32, #tpu.memory_space<vmem>>, vector<1x8x128xf32>
    %115 = vector.shape_cast %114 : vector<1x8x128xf32> to vector<8x128xf32>
    %116 = vector.shape_cast %112 : vector<8x128xf32> to vector<1x8x128xf32>
    tpu.vector_store %arg10[%113, %c0_39, %c0_40], %116 {strides = array<i32>} : memref<8x8x128xf32, #tpu.memory_space<vmem>>, vector<1x8x128xf32>,
    %c3_i32 = arith.constant 3 : i32
    %117 = arith.index_cast %c3_i32 : i32 to index
    %c0_41 = arith.constant 0 : index
    %c0_42 = arith.constant 0 : index
    %118 = vector.load %arg9[%117, %c0_41, %c0_42] : memref<8x8x512xf32, #tpu.memory_space<vmem>>, vector<1x8x512xf32>
    %119 = vector.shape_cast %118 : vector<1x8x512xf32> to vector<8x512xf32>
    %cst_43 = arith.constant dense<0.000000e+00> : vector<8x512xf32>
    %120 = tpu.matmul %112, %12, %cst_43 {dimension_numbers = #tpu.dot_dimension_numbers<[1], [0], [0], [1], [0, 0, 1, 1], [], []>} : vector<8x128xf32>, vector<128x512xf32>, vector<8x512xf32> -> vector<8x512xf32>
    %121 = arith.addf %119, %120 : vector<8x512xf32>
    %122 = vector.extract_strided_slice %121 {offsets = [0, 0], sizes = [8, 128], strides = [1, 1]} : vector<8x512xf32> to vector<8x128xf32>
    %123 = arith.negf %122 : vector<8x128xf32>
    %124 = math.exp %123 : vector<8x128xf32>
    %cst_44 = arith.constant 1.000000e+00 : f32
    %125 = vector.broadcast %cst_44 : f32 to vector<8x128xf32>
    %126 = arith.addf %125, %124 : vector<8x128xf32>
    %127 = arith.divf %125, %126 : vector<8x128xf32>
    %128 = vector.extract_strided_slice %121 {offsets = [0, 128], sizes = [8, 128], strides = [1, 1]} : vector<8x512xf32> to vector<8x128xf32>
    %129 = arith.negf %128 : vector<8x128xf32>
    %130 = math.exp %129 : vector<8x128xf32>
    %cst_45 = arith.constant 1.000000e+00 : f32
    %131 = vector.broadcast %cst_45 : f32 to vector<8x128xf32>
    %132 = arith.addf %131, %130 : vector<8x128xf32>
    %133 = arith.divf %131, %132 : vector<8x128xf32>
    %134 = vector.extract_strided_slice %121 {offsets = [0, 256], sizes = [8, 128], strides = [1, 1]} : vector<8x512xf32> to vector<8x128xf32>
    %135 = math.tanh %134 : vector<8x128xf32>
    %136 = vector.extract_strided_slice %121 {offsets = [0, 384], sizes = [8, 128], strides = [1, 1]} : vector<8x512xf32> to vector<8x128xf32>
    %137 = arith.negf %136 : vector<8x128xf32>
    %138 = math.exp %137 : vector<8x128xf32>
    %cst_46 = arith.constant 1.000000e+00 : f32
    %139 = vector.broadcast %cst_46 : f32 to vector<8x128xf32>
    %140 = arith.addf %139, %138 : vector<8x128xf32>
    %141 = arith.divf %139, %140 : vector<8x128xf32>
    %142 = arith.mulf %133, %110 : vector<8x128xf32>
    %143 = arith.mulf %127, %135 : vector<8x128xf32>
    %144 = arith.addf %142, %143 : vector<8x128xf32>
    %145 = math.tanh %144 : vector<8x128xf32>
    %146 = arith.mulf %141, %145 : vector<8x128xf32>
    %147 = arith.index_cast %c3_i32 : i32 to index
    %c0_47 = arith.constant 0 : index
    %c0_48 = arith.constant 0 : index
    %148 = vector.load %arg10[%147, %c0_47, %c0_48] : memref<8x8x128xf32, #tpu.memory_space<vmem>>, vector<1x8x128xf32>
    %149 = vector.shape_cast %148 : vector<1x8x128xf32> to vector<8x128xf32>
    %150 = vector.shape_cast %146 : vector<8x128xf32> to vector<1x8x128xf32>
    tpu.vector_store %arg10[%147, %c0_47, %c0_48], %150 {strides = array<i32>} : memref<8x8x128xf32, #tpu.memory_space<vmem>>, vector<1x8x128xf32>,
    %c4_i32 = arith.constant 4 : i32
    %151 = arith.index_cast %c4_i32 : i32 to index
    %c0_49 = arith.constant 0 : index
    %c0_50 = arith.constant 0 : index
    %152 = vector.load %arg9[%151, %c0_49, %c0_50] : memref<8x8x512xf32, #tpu.memory_space<vmem>>, vector<1x8x512xf32>
    %153 = vector.shape_cast %152 : vector<1x8x512xf32> to vector<8x512xf32>
    %cst_51 = arith.constant dense<0.000000e+00> : vector<8x512xf32>
    %154 = tpu.matmul %146, %12, %cst_51 {dimension_numbers = #tpu.dot_dimension_numbers<[1], [0], [0], [1], [0, 0, 1, 1], [], []>} : vector<8x128xf32>, vector<128x512xf32>, vector<8x512xf32> -> vector<8x512xf32>
    %155 = arith.addf %153, %154 : vector<8x512xf32>
    %156 = vector.extract_strided_slice %155 {offsets = [0, 0], sizes = [8, 128], strides = [1, 1]} : vector<8x512xf32> to vector<8x128xf32>
    %157 = arith.negf %156 : vector<8x128xf32>
    %158 = math.exp %157 : vector<8x128xf32>
    %cst_52 = arith.constant 1.000000e+00 : f32
    %159 = vector.broadcast %cst_52 : f32 to vector<8x128xf32>
    %160 = arith.addf %159, %158 : vector<8x128xf32>
    %161 = arith.divf %159, %160 : vector<8x128xf32>
    %162 = vector.extract_strided_slice %155 {offsets = [0, 128], sizes = [8, 128], strides = [1, 1]} : vector<8x512xf32> to vector<8x128xf32>
    %163 = arith.negf %162 : vector<8x128xf32>
    %164 = math.exp %163 : vector<8x128xf32>
    %cst_53 = arith.constant 1.000000e+00 : f32
    %165 = vector.broadcast %cst_53 : f32 to vector<8x128xf32>
    %166 = arith.addf %165, %164 : vector<8x128xf32>
    %167 = arith.divf %165, %166 : vector<8x128xf32>
    %168 = vector.extract_strided_slice %155 {offsets = [0, 256], sizes = [8, 128], strides = [1, 1]} : vector<8x512xf32> to vector<8x128xf32>
    %169 = math.tanh %168 : vector<8x128xf32>
    %170 = vector.extract_strided_slice %155 {offsets = [0, 384], sizes = [8, 128], strides = [1, 1]} : vector<8x512xf32> to vector<8x128xf32>
    %171 = arith.negf %170 : vector<8x128xf32>
    %172 = math.exp %171 : vector<8x128xf32>
    %cst_54 = arith.constant 1.000000e+00 : f32
    %173 = vector.broadcast %cst_54 : f32 to vector<8x128xf32>
    %174 = arith.addf %173, %172 : vector<8x128xf32>
    %175 = arith.divf %173, %174 : vector<8x128xf32>
    %176 = arith.mulf %167, %144 : vector<8x128xf32>
    %177 = arith.mulf %161, %169 : vector<8x128xf32>
    %178 = arith.addf %176, %177 : vector<8x128xf32>
    %179 = math.tanh %178 : vector<8x128xf32>
    %180 = arith.mulf %175, %179 : vector<8x128xf32>
    %181 = arith.index_cast %c4_i32 : i32 to index
    %c0_55 = arith.constant 0 : index
    %c0_56 = arith.constant 0 : index
    %182 = vector.load %arg10[%181, %c0_55, %c0_56] : memref<8x8x128xf32, #tpu.memory_space<vmem>>, vector<1x8x128xf32>
    %183 = vector.shape_cast %182 : vector<1x8x128xf32> to vector<8x128xf32>
    %184 = vector.shape_cast %180 : vector<8x128xf32> to vector<1x8x128xf32>
    tpu.vector_store %arg10[%181, %c0_55, %c0_56], %184 {strides = array<i32>} : memref<8x8x128xf32, #tpu.memory_space<vmem>>, vector<1x8x128xf32>,
    %c5_i32 = arith.constant 5 : i32
    %185 = arith.index_cast %c5_i32 : i32 to index
    %c0_57 = arith.constant 0 : index
    %c0_58 = arith.constant 0 : index
    %186 = vector.load %arg9[%185, %c0_57, %c0_58] : memref<8x8x512xf32, #tpu.memory_space<vmem>>, vector<1x8x512xf32>
    %187 = vector.shape_cast %186 : vector<1x8x512xf32> to vector<8x512xf32>
    %cst_59 = arith.constant dense<0.000000e+00> : vector<8x512xf32>
    %188 = tpu.matmul %180, %12, %cst_59 {dimension_numbers = #tpu.dot_dimension_numbers<[1], [0], [0], [1], [0, 0, 1, 1], [], []>} : vector<8x128xf32>, vector<128x512xf32>, vector<8x512xf32> -> vector<8x512xf32>
    %189 = arith.addf %187, %188 : vector<8x512xf32>
    %190 = vector.extract_strided_slice %189 {offsets = [0, 0], sizes = [8, 128], strides = [1, 1]} : vector<8x512xf32> to vector<8x128xf32>
    %191 = arith.negf %190 : vector<8x128xf32>
    %192 = math.exp %191 : vector<8x128xf32>
    %cst_60 = arith.constant 1.000000e+00 : f32
    %193 = vector.broadcast %cst_60 : f32 to vector<8x128xf32>
    %194 = arith.addf %193, %192 : vector<8x128xf32>
    %195 = arith.divf %193, %194 : vector<8x128xf32>
    %196 = vector.extract_strided_slice %189 {offsets = [0, 128], sizes = [8, 128], strides = [1, 1]} : vector<8x512xf32> to vector<8x128xf32>
    %197 = arith.negf %196 : vector<8x128xf32>
    %198 = math.exp %197 : vector<8x128xf32>
    %cst_61 = arith.constant 1.000000e+00 : f32
    %199 = vector.broadcast %cst_61 : f32 to vector<8x128xf32>
    %200 = arith.addf %199, %198 : vector<8x128xf32>
    %201 = arith.divf %199, %200 : vector<8x128xf32>
    %202 = vector.extract_strided_slice %189 {offsets = [0, 256], sizes = [8, 128], strides = [1, 1]} : vector<8x512xf32> to vector<8x128xf32>
    %203 = math.tanh %202 : vector<8x128xf32>
    %204 = vector.extract_strided_slice %189 {offsets = [0, 384], sizes = [8, 128], strides = [1, 1]} : vector<8x512xf32> to vector<8x128xf32>
    %205 = arith.negf %204 : vector<8x128xf32>
    %206 = math.exp %205 : vector<8x128xf32>
    %cst_62 = arith.constant 1.000000e+00 : f32
    %207 = vector.broadcast %cst_62 : f32 to vector<8x128xf32>
    %208 = arith.addf %207, %206 : vector<8x128xf32>
    %209 = arith.divf %207, %208 : vector<8x128xf32>
    %210 = arith.mulf %201, %178 : vector<8x128xf32>
    %211 = arith.mulf %195, %203 : vector<8x128xf32>
    %212 = arith.addf %210, %211 : vector<8x128xf32>
    %213 = math.tanh %212 : vector<8x128xf32>
    %214 = arith.mulf %209, %213 : vector<8x128xf32>
    %215 = arith.index_cast %c5_i32 : i32 to index
    %c0_63 = arith.constant 0 : index
    %c0_64 = arith.constant 0 : index
    %216 = vector.load %arg10[%215, %c0_63, %c0_64] : memref<8x8x128xf32, #tpu.memory_space<vmem>>, vector<1x8x128xf32>
    %217 = vector.shape_cast %216 : vector<1x8x128xf32> to vector<8x128xf32>
    %218 = vector.shape_cast %214 : vector<8x128xf32> to vector<1x8x128xf32>
    tpu.vector_store %arg10[%215, %c0_63, %c0_64], %218 {strides = array<i32>} : memref<8x8x128xf32, #tpu.memory_space<vmem>>, vector<1x8x128xf32>,
    %c6_i32 = arith.constant 6 : i32
    %219 = arith.index_cast %c6_i32 : i32 to index
    %c0_65 = arith.constant 0 : index
    %c0_66 = arith.constant 0 : index
    %220 = vector.load %arg9[%219, %c0_65, %c0_66] : memref<8x8x512xf32, #tpu.memory_space<vmem>>, vector<1x8x512xf32>
    %221 = vector.shape_cast %220 : vector<1x8x512xf32> to vector<8x512xf32>
    %cst_67 = arith.constant dense<0.000000e+00> : vector<8x512xf32>
    %222 = tpu.matmul %214, %12, %cst_67 {dimension_numbers = #tpu.dot_dimension_numbers<[1], [0], [0], [1], [0, 0, 1, 1], [], []>} : vector<8x128xf32>, vector<128x512xf32>, vector<8x512xf32> -> vector<8x512xf32>
    %223 = arith.addf %221, %222 : vector<8x512xf32>
    %224 = vector.extract_strided_slice %223 {offsets = [0, 0], sizes = [8, 128], strides = [1, 1]} : vector<8x512xf32> to vector<8x128xf32>
    %225 = arith.negf %224 : vector<8x128xf32>
    %226 = math.exp %225 : vector<8x128xf32>
    %cst_68 = arith.constant 1.000000e+00 : f32
    %227 = vector.broadcast %cst_68 : f32 to vector<8x128xf32>
    %228 = arith.addf %227, %226 : vector<8x128xf32>
    %229 = arith.divf %227, %228 : vector<8x128xf32>
    %230 = vector.extract_strided_slice %223 {offsets = [0, 128], sizes = [8, 128], strides = [1, 1]} : vector<8x512xf32> to vector<8x128xf32>
    %231 = arith.negf %230 : vector<8x128xf32>
    %232 = math.exp %231 : vector<8x128xf32>
    %cst_69 = arith.constant 1.000000e+00 : f32
    %233 = vector.broadcast %cst_69 : f32 to vector<8x128xf32>
    %234 = arith.addf %233, %232 : vector<8x128xf32>
    %235 = arith.divf %233, %234 : vector<8x128xf32>
    %236 = vector.extract_strided_slice %223 {offsets = [0, 256], sizes = [8, 128], strides = [1, 1]} : vector<8x512xf32> to vector<8x128xf32>
    %237 = math.tanh %236 : vector<8x128xf32>
    %238 = vector.extract_strided_slice %223 {offsets = [0, 384], sizes = [8, 128], strides = [1, 1]} : vector<8x512xf32> to vector<8x128xf32>
    %239 = arith.negf %238 : vector<8x128xf32>
    %240 = math.exp %239 : vector<8x128xf32>
    %cst_70 = arith.constant 1.000000e+00 : f32
    %241 = vector.broadcast %cst_70 : f32 to vector<8x128xf32>
    %242 = arith.addf %241, %240 : vector<8x128xf32>
    %243 = arith.divf %241, %242 : vector<8x128xf32>
    %244 = arith.mulf %235, %212 : vector<8x128xf32>
    %245 = arith.mulf %229, %237 : vector<8x128xf32>
    %246 = arith.addf %244, %245 : vector<8x128xf32>
    %247 = math.tanh %246 : vector<8x128xf32>
    %248 = arith.mulf %243, %247 : vector<8x128xf32>
    %249 = arith.index_cast %c6_i32 : i32 to index
    %c0_71 = arith.constant 0 : index
    %c0_72 = arith.constant 0 : index
    %250 = vector.load %arg10[%249, %c0_71, %c0_72] : memref<8x8x128xf32, #tpu.memory_space<vmem>>, vector<1x8x128xf32>
    %251 = vector.shape_cast %250 : vector<1x8x128xf32> to vector<8x128xf32>
    %252 = vector.shape_cast %248 : vector<8x128xf32> to vector<1x8x128xf32>
    tpu.vector_store %arg10[%249, %c0_71, %c0_72], %252 {strides = array<i32>} : memref<8x8x128xf32, #tpu.memory_space<vmem>>, vector<1x8x128xf32>,
    %c7_i32 = arith.constant 7 : i32
    %253 = arith.index_cast %c7_i32 : i32 to index
    %c0_73 = arith.constant 0 : index
    %c0_74 = arith.constant 0 : index
    %254 = vector.load %arg9[%253, %c0_73, %c0_74] : memref<8x8x512xf32, #tpu.memory_space<vmem>>, vector<1x8x512xf32>
    %255 = vector.shape_cast %254 : vector<1x8x512xf32> to vector<8x512xf32>
    %cst_75 = arith.constant dense<0.000000e+00> : vector<8x512xf32>
    %256 = tpu.matmul %248, %12, %cst_75 {dimension_numbers = #tpu.dot_dimension_numbers<[1], [0], [0], [1], [0, 0, 1, 1], [], []>} : vector<8x128xf32>, vector<128x512xf32>, vector<8x512xf32> -> vector<8x512xf32>
    %257 = arith.addf %255, %256 : vector<8x512xf32>
    %258 = vector.extract_strided_slice %257 {offsets = [0, 0], sizes = [8, 128], strides = [1, 1]} : vector<8x512xf32> to vector<8x128xf32>
    %259 = arith.negf %258 : vector<8x128xf32>
    %260 = math.exp %259 : vector<8x128xf32>
    %cst_76 = arith.constant 1.000000e+00 : f32
    %261 = vector.broadcast %cst_76 : f32 to vector<8x128xf32>
    %262 = arith.addf %261, %260 : vector<8x128xf32>
    %263 = arith.divf %261, %262 : vector<8x128xf32>
    %264 = vector.extract_strided_slice %257 {offsets = [0, 128], sizes = [8, 128], strides = [1, 1]} : vector<8x512xf32> to vector<8x128xf32>
    %265 = arith.negf %264 : vector<8x128xf32>
    %266 = math.exp %265 : vector<8x128xf32>
    %cst_77 = arith.constant 1.000000e+00 : f32
    %267 = vector.broadcast %cst_77 : f32 to vector<8x128xf32>
    %268 = arith.addf %267, %266 : vector<8x128xf32>
    %269 = arith.divf %267, %268 : vector<8x128xf32>
    %270 = vector.extract_strided_slice %257 {offsets = [0, 256], sizes = [8, 128], strides = [1, 1]} : vector<8x512xf32> to vector<8x128xf32>
    %271 = math.tanh %270 : vector<8x128xf32>
    %272 = vector.extract_strided_slice %257 {offsets = [0, 384], sizes = [8, 128], strides = [1, 1]} : vector<8x512xf32> to vector<8x128xf32>
    %273 = arith.negf %272 : vector<8x128xf32>
    %274 = math.exp %273 : vector<8x128xf32>
    %cst_78 = arith.constant 1.000000e+00 : f32
    %275 = vector.broadcast %cst_78 : f32 to vector<8x128xf32>
    %276 = arith.addf %275, %274 : vector<8x128xf32>
    %277 = arith.divf %275, %276 : vector<8x128xf32>
    %278 = arith.mulf %269, %246 : vector<8x128xf32>
    %279 = arith.mulf %263, %271 : vector<8x128xf32>
    %280 = arith.addf %278, %279 : vector<8x128xf32>
    %281 = math.tanh %280 : vector<8x128xf32>
    %282 = arith.mulf %277, %281 : vector<8x128xf32>
    %283 = arith.index_cast %c7_i32 : i32 to index
    %c0_79 = arith.constant 0 : index
    %c0_80 = arith.constant 0 : index
    %284 = vector.load %arg10[%283, %c0_79, %c0_80] : memref<8x8x128xf32, #tpu.memory_space<vmem>>, vector<1x8x128xf32>
    %285 = vector.shape_cast %284 : vector<1x8x128xf32> to vector<8x128xf32>
    %286 = vector.shape_cast %282 : vector<8x128xf32> to vector<1x8x128xf32>
    tpu.vector_store %arg10[%283, %c0_79, %c0_80], %286 {strides = array<i32>} : memref<8x8x128xf32, #tpu.memory_space<vmem>>, vector<1x8x128xf32>,
    %c8_i32 = arith.constant 8 : i32
    %c0_81 = arith.constant 0 : index
    %c0_82 = arith.constant 0 : index
    %287 = vector.load %arg7[%c0_81, %c0_82] : memref<8x128xf32, #tpu.memory_space<vmem>>, vector<8x128xf32>
    tpu.vector_store %arg7[%c0_81, %c0_82], %282 {strides = array<i32>} : memref<8x128xf32, #tpu.memory_space<vmem>>, vector<8x128xf32>,
    %c0_83 = arith.constant 0 : index
    %c0_84 = arith.constant 0 : index
    %288 = vector.load %arg8[%c0_83, %c0_84] : memref<8x128xf32, #tpu.memory_space<vmem>>, vector<8x128xf32>
    tpu.vector_store %arg8[%c0_83, %c0_84], %280 {strides = array<i32>} : memref<8x128xf32, #tpu.memory_space<vmem>>, vector<8x128xf32>,
    %c0_85 = arith.constant 0 : index
    %c0_86 = arith.constant 0 : index
    %c0_87 = arith.constant 0 : index
    %289 = vector.load %arg10[%c0_85, %c0_86, %c0_87] : memref<8x8x128xf32, #tpu.memory_space<vmem>>, vector<8x8x128xf32>
    %290 = vector.shape_cast %289 : vector<8x8x128xf32> to vector<64x128xf32>
    %c0_88 = arith.constant 0 : index
    %c0_89 = arith.constant 0 : index
    %291 = vector.load %arg5[%c0_88, %c0_89] : memref<128x128xf32, #tpu.memory_space<vmem>>, vector<128x128xf32>
    %cst_90 = arith.constant dense<0.000000e+00> : vector<64x128xf32>
    %292 = tpu.matmul %290, %291, %cst_90 {dimension_numbers = #tpu.dot_dimension_numbers<[1], [0], [0], [1], [0, 0, 1, 1], [], []>} : vector<64x128xf32>, vector<128x128xf32>, vector<64x128xf32> -> vector<64x128xf32>
    %293 = vector.shape_cast %292 : vector<64x128xf32> to vector<8x8x128xf32>
    %c0_91 = arith.constant 0 : index
    %c0_92 = arith.constant 0 : index
    %c0_93 = arith.constant 0 : index
    %294 = vector.load %arg6[%c0_91, %c0_92, %c0_93] : memref<8x8x128xf32, #tpu.memory_space<vmem>>, vector<8x8x128xf32>
    tpu.vector_store %arg6[%c0_91, %c0_92, %c0_93], %293 {strides = array<i32>} : memref<8x8x128xf32, #tpu.memory_space<vmem>>, vector<8x8x128xf32>,
    return
  }
  func.func @transform_0(%arg0: i32) -> (i32, i32, i32) {
    %c0_i32 = arith.constant 0 : i32
    %c0_i32_0 = arith.constant 0 : i32
    %c0_i32_1 = arith.constant 0 : i32
    return %arg0, %c0_i32, %c0_i32_0 : i32, i32, i32
  }
  func.func @transform_1(%arg0: i32) -> (i32, i32) {
    %c0_i32 = arith.constant 0 : i32
    %c0_i32_0 = arith.constant 0 : i32
    %c0_i32_1 = arith.constant 0 : i32
    return %c0_i32, %c0_i32_0 : i32, i32
  }
  func.func @transform_2(%arg0: i32) -> (i32, i32) {
    %c0_i32 = arith.constant 0 : i32
    %c0_i32_0 = arith.constant 0 : i32
    %c0_i32_1 = arith.constant 0 : i32
    return %c0_i32, %c0_i32_0 : i32, i32
  }
  func.func @transform_3(%arg0: i32) -> (i32, i32) {
    %c0_i32 = arith.constant 0 : i32
    %c0_i32_0 = arith.constant 0 : i32
    %c0_i32_1 = arith.constant 0 : i32
    return %c0_i32, %c0_i32_0 : i32, i32
  }
  func.func @transform_4(%arg0: i32) -> (i32, i32) {
    %c0_i32 = arith.constant 0 : i32
    %c0_i32_0 = arith.constant 0 : i32
    %c0_i32_1 = arith.constant 0 : i32
    return %c0_i32, %c0_i32_0 : i32, i32
  }
  func.func @transform_5(%arg0: i32) -> (i32, i32, i32) {
    %c0_i32 = arith.constant 0 : i32
    %c0_i32_0 = arith.constant 0 : i32
    %c0_i32_1 = arith.constant 0 : i32
    return %arg0, %c0_i32, %c0_i32_0 : i32, i32, i32
  }
}

</mosaic_0001>

<bundles_post_ra>
// kernel: tpu_custom_call.1
= control target key start
LH: loop header
LB: loop body
LE: loop exit
PB: predicated region body
PF: predicated region fallthrough
CT: control target
= control target key end

     0   :  { %10 = vsyncpa [#allocation7], 0  ;;  %s3760_s0 = inlined_call_operand.hbm [shape: f32[8,8,128], index: 0, kind: input, shape index: {}]   ;;  %s3761_s1 = inlined_call_operand.hbm [shape: f32[128,512], index: 1, kind: input, shape index: {}]   ;;  %s3762_s2 = inlined_call_operand.hbm [shape: f32[128,512], index: 2, kind: input, shape index: {}]   ;;  %s3763_s3 = inlined_call_operand.hbm [shape: f32[1,512], index: 3, kind: input, shape index: {}]   ;;  %s3764_s4 = inlined_call_operand.hbm [shape: f32[128,128], index: 4, kind: input, shape index: {}]   ;;  %s3765_s5 = inlined_call_operand.hbm [shape: f32[8,8,128], index: 5, kind: output, shape index: {}]  }
   0x1   :  { %11 = vsyncpa [#allocation10], 0 }
   0x2   :  { %12 = vsyncpa [#allocation13], 0 }
   0x3   :  { %13 = vsyncpa [#allocation8], 0  ;;  %s3126_s18 = smov [#allocation9]   ;;  %s2986_s22 = scalar_lea.hbm %s3761_s1, 8192 }
   0x4   :  { %s31_s19 = sshll.u32 %s3126_s18, 4  ;;  %p2987_p0 = scmp.ne.s32.totalorder %s3761_s1, %s2986_s22  ;;  %s32_s19 = int_to_ptr.vmem [resolvable:$true] %s31_s19 }
   0x5   :  { %p2990_p1 = scmp.lt.u32.totalorder %s2986_s22, %s3761_s1 }
   0x7   :  { %p2992_p2 = pnand %p2990_p1, %p2987_p0 }
   0x9   :  { %2995 = shalt.err (!%p2992_p2)
}
   0xa   :  { %s2996_s27 = scalar_lea.vmem %s32_s19, 8192  ;;  %p3001_p4 = scmp.lt.s32.totalorder %s32_s19, %s32_s19 }
   0xb   :  { %p2997_p3 = scmp.ne.s32.totalorder %s32_s19, %s2996_s27  ;;  %p3002_p5 = scmp.lt.s32.totalorder %s2996_s27, %s2996_s27 }
   0xd   :  { %p3003_p6 = por %p3002_p5, %p3001_p4 }
   0xf   :  { %p3004_p7 = pnand %p3003_p6, %p2997_p3 }
  0x11   :  { %3007 = shalt.err (!%p3004_p7)
}
  0x12   :  { %s3127_s28 = smov 512   ;;  %s3128_s29 = smov 32  }
  0x13   :  { %37 = dma.hbm_to_vmem [thread:$0]  %s3761_s1, 8192, %s32_s19, [#allocation10], %s3127_s28, %s3127_s28, %s3128_s29  }
  0x14   :  { %s3129_s7 = smov [#allocation12]   ;;  %s3130_s9 = smov [#allocation6]  }
  0x15   :  { %s56_s8 = sshll.u32 %s3129_s7, 4  ;;  %s19_s10 = sshll.u32 %s3130_s9, 4  ;;  %s57_s8 = int_to_ptr.vmem [resolvable:$true] %s56_s8  ;;  %s20_s10 = int_to_ptr.vmem [resolvable:$true] %s19_s10 }
  0x16   :  { %s3008_s13 = scalar_lea.hbm %s3763_s3, 64 }
  0x17   :  { %p3009_p8 = scmp.ne.s32.totalorder %s3763_s3, %s3008_s13  ;;  %p3012_p9 = scmp.lt.u32.totalorder %s3008_s13, %s3763_s3 }
  0x19   :  { %p3014_p10 = pnand %p3012_p9, %p3009_p8 }
  0x1b   :  { %3017 = shalt.err (!%p3014_p10)
}
  0x1c   :  { %s3018_s1 = scalar_lea.vmem %s57_s8, 64  ;;  %p3023_p12 = scmp.lt.s32.totalorder %s57_s8, %s57_s8 }
  0x1d   :  { %p3019_p11 = scmp.ne.s32.totalorder %s57_s8, %s3018_s1  ;;  %p3024_p13 = scmp.lt.s32.totalorder %s3018_s1, %s3018_s1 }
  0x1f   :  { %p3025_p0 = por %p3024_p13, %p3023_p12 }
  0x21   :  { %p3026_p1 = pnand %p3025_p0, %p3019_p11 }
  0x23   :  { %3029 = shalt.err (!%p3026_p1)
}
  0x24   :  { %59 = dma.hbm_to_vmem [thread:$0]  %s3763_s3, 64, %s57_s8, [#allocation13]  }
  0x25   :  { %s3030_s22 = scalar_lea.hbm %s3760_s0, 1024 }
  0x26   :  { %p3031_p2 = scmp.ne.s32.totalorder %s3760_s0, %s3030_s22  ;;  %p3034_p3 = scmp.lt.u32.totalorder %s3030_s22, %s3760_s0 }
  0x28   :  { %p3036_p4 = pnand %p3034_p3, %p3031_p2 }
  0x2a   :  { %3039 = shalt.err (!%p3036_p4)
}
  0x2b   :  { %s3040_s27 = scalar_lea.vmem %s20_s10, 1024  ;;  %p3045_p6 = scmp.lt.s32.totalorder %s20_s10, %s20_s10 }
  0x2c   :  { %p3041_p5 = scmp.ne.s32.totalorder %s20_s10, %s3040_s27  ;;  %p3046_p7 = scmp.lt.s32.totalorder %s3040_s27, %s3040_s27 }
  0x2e   :  { %p3047_p8 = por %p3046_p7, %p3045_p6 }
  0x30   :  { %p3048_p9 = pnand %p3047_p8, %p3041_p5 }
  0x32   :  { %3051 = shalt.err (!%p3048_p9)
}
  0x33   :  { %s3131_s3 = smov 128   ;;  %s3132_s30 = smov 8  }
  0x34   :  { %25 = dma.hbm_to_vmem [thread:$0]  %s3760_s0, 1024, %s20_s10, [#allocation7], %s3131_s3, %s3131_s3, %s3132_s30  }
  0x35   :  { %s3133_s8 = smov [#allocation11]   ;;  %s3134_s11 = smov [#allocation14]  }
  0x36   :  { %s43_s9 = sshll.u32 %s3133_s8, 4  ;;  %s65_s12 = sshll.u32 %s3134_s11, 4  ;;  %s44_s9 = int_to_ptr.vmem [resolvable:$true] %s43_s9  ;;  %s66_s12 = int_to_ptr.vmem [resolvable:$true] %s65_s12 }
  0x37   :  { %s3052_s15 = scalar_lea.hbm %s3762_s2, 8192 }
  0x38   :  { %p3053_p10 = scmp.ne.s32.totalorder %s3762_s2, %s3052_s15  ;;  %p3056_p11 = scmp.lt.u32.totalorder %s3052_s15, %s3762_s2 }
  0x3a   :  { %p3058_p12 = pnand %p3056_p11, %p3053_p10 }
  0x3c   :  { %3061 = shalt.err (!%p3058_p12)
}
  0x3d   :  { %s3062_s0 = scalar_lea.vmem %s44_s9, 8192  ;;  %p3067_p0 = scmp.lt.s32.totalorder %s44_s9, %s44_s9 }
  0x3e   :  { %p3063_p13 = scmp.ne.s32.totalorder %s44_s9, %s3062_s0  ;;  %p3068_p1 = scmp.lt.s32.totalorder %s3062_s0, %s3062_s0 }
  0x40   :  { %p3069_p2 = por %p3068_p1, %p3067_p0 }
  0x42   :  { %p3070_p3 = pnand %p3069_p2, %p3063_p13 }
  0x44   :  { %3073 = shalt.err (!%p3070_p3)
}
  0x45   :  { %49 = dma.hbm_to_vmem [thread:$0]  %s3762_s2, 8192, %s44_s9, [#allocation10], %s3127_s28, %s3127_s28, %s3128_s29  }
  0x46   :  { %s3074_s22 = scalar_lea.hbm %s3764_s4, 2048 }
  0x47   :  { %p3075_p4 = scmp.ne.s32.totalorder %s3764_s4, %s3074_s22  ;;  %p3078_p5 = scmp.lt.u32.totalorder %s3074_s22, %s3764_s4 }
  0x49   :  { %p3080_p6 = pnand %p3078_p5, %p3075_p4 }
  0x4b   :  { %3083 = shalt.err (!%p3080_p6)
}
  0x4c   :  { %s3084_s27 = scalar_lea.vmem %s66_s12, 2048  ;;  %p3089_p8 = scmp.lt.s32.totalorder %s66_s12, %s66_s12 }
  0x4d   :  { %p3085_p7 = scmp.ne.s32.totalorder %s66_s12, %s3084_s27  ;;  %p3090_p9 = scmp.lt.s32.totalorder %s3084_s27, %s3084_s27 }
  0x4f   :  { %p3091_p10 = por %p3090_p9, %p3089_p8 }
  0x51   :  { %p3092_p11 = pnand %p3091_p10, %p3085_p7 }
  0x53   :  { %3095 = shalt.err (!%p3092_p11)
}
  0x54   :  { %71 = dma.hbm_to_vmem [thread:$0]  %s3764_s4, 2048, %s66_s12, [#allocation13], %s3131_s3, %s3131_s3, %s3132_s30  }
  0x55   :  { %3118 = dma.done.wait [#allocation7], 1024  }
  0x56   :  { %3119 = vsyncadd [#allocation7], 4294966272 }
  0x57   :  { %3120 = dma.done.wait [#allocation10], 16384  }
  0x58   :  { %3121 = vsyncadd [#allocation10], 4294950912 }
  0x59   :  { %3122 = dma.done.wait [#allocation13], 2112  }
  0x5a   :  { %3123 = vsyncadd [#allocation13], 4294965184  ;;  %v3766_v0 = vmov 0.0   ;;  %v102_v1 = vld [vmem:[#allocation9 + $0x8] sm:$0xff]  ;;  %v101_v3 = vld [vmem:[#allocation9] sm:$0xff]  ;;  %s3136_s4 = smov [#allocation15]  }
  0x5b   :  { %251 = vmatprep.mubr.f32.mxu1 %v3766_v0  ;;  %579 = vmatprep.mubr.f32.mxu0 %v3766_v0  ;;  %v106_v2 = vld [vmem:[#allocation9 + $0x28] sm:$0xff]  ;;  %v105_v5 = vld [vmem:[#allocation9 + $0x20] sm:$0xff]  ;;  %s2069_s29 = sshll.u32 %s3136_s4, 4  ;;  %s2070_s29 = int_to_ptr.vmem [resolvable:$true] %s2069_s29 }
  0x5c   :  { %v2175_v4 = vpack.c.bf16 %v106_v2, %v102_v1  ;;  %v446_v6 = vld [vmem:[#allocation11 + $0x8] sm:$0xff]  ;;  %v2177_v8 = vpack.c.bf16 %v105_v5, %v101_v3  ;;  %v445_v10 = vld [vmem:[#allocation11] sm:$0xff]  ;;  %s3096_s6 = scalar_lea.vmem %s2070_s29, 1024  ;;  %p3101_p13 = scmp.lt.s32.totalorder %s2070_s29, %s2070_s29 }
  0x5d   :  { %v450_v7 = vld [vmem:[#allocation11 + $0x28] sm:$0xff]  ;;  %v449_v11 = vld [vmem:[#allocation11 + $0x20] sm:$0xff]  ;;  %p3097_p12 = scmp.ne.s32.totalorder %s2070_s29, %s3096_s6  ;;  %p3102_p0 = scmp.lt.s32.totalorder %s3096_s6, %s3096_s6 }
  0x5e   :  { %v3241_v9 = vpack.c.bf16 %v450_v7, %v446_v6  ;;  %v110_v12 = vld [vmem:[#allocation9 + $0x48] sm:$0xff]  ;;  %2176 = vmatprep.subr.bf16.mxu1 %v2175_v4  ;;  %v3243_v13 = vpack.c.bf16 %v449_v11, %v445_v10  ;;  %v109_v15 = vld [vmem:[#allocation9 + $0x40] sm:$0xff] }
  0x5f   :  { %v114_v14 = vld [vmem:[#allocation9 + $0x68] sm:$0xff]  ;;  %v113_v16 = vld [vmem:[#allocation9 + $0x60] sm:$0xff]  ;;  %2178 = vmatpush1.bf16.msra.mxu1 %v2177_v8  ;;  %p3103_p1 = por %p3102_p0, %p3101_p13 }
  0x60   :  { %2240 = vmatprep.subr.bf16.mxu0 %v3241_v9  ;;  %v2179_v17 = vpack.c.bf16 %v114_v14, %v110_v12  ;;  %v2181_v18 = vpack.c.bf16 %v113_v16, %v109_v15  ;;  %v454_v19 = vld [vmem:[#allocation11 + $0x48] sm:$0xff]  ;;  %v453_v21 = vld [vmem:[#allocation11 + $0x40] sm:$0xff] }
  0x61   :  { %v458_v20 = vld [vmem:[#allocation11 + $0x68] sm:$0xff]  ;;  %2242 = vmatpush1.bf16.msra.mxu0 %v3243_v13  ;;  %v457_v23 = vld [vmem:[#allocation11 + $0x60] sm:$0xff]  ;;  %p3104_p2 = pnand %p3103_p1, %p3097_p12 }
  0x62   :  { %v3247_v22 = vpack.c.bf16 %v458_v20, %v454_v19  ;;  %v118_v24 = vld [vmem:[#allocation9 + $0x88] sm:$0xff]  ;;  %2180 = vmatprep.subr.bf16.mxu1 %v2179_v17  ;;  %v3249_v26 = vpack.c.bf16 %v457_v23, %v453_v21  ;;  %v117_v28 = vld [vmem:[#allocation9 + $0x80] sm:$0xff] }
  0x63   :  { %v122_v25 = vld [vmem:[#allocation9 + $0xa8] sm:$0xff]  ;;  %v121_v29 = vld [vmem:[#allocation9 + $0xa0] sm:$0xff]  ;;  %2182 = vmatpush1.bf16.msra.mxu1 %v2181_v18 }
  0x64   :  { %v2183_v27 = vpack.c.bf16 %v122_v25, %v118_v24  ;;  %v462_v30 = vld [vmem:[#allocation11 + $0x88] sm:$0xff]  ;;  %2244 = vmatprep.subr.bf16.mxu0 %v3247_v22  ;;  %v461_v32 = vld [vmem:[#allocation11 + $0x80] sm:$0xff]  ;;  %v2185_v34 = vpack.c.bf16 %v121_v29, %v117_v28 }
  0x65   :  { %v466_v31 = vld [vmem:[#allocation11 + $0xa8] sm:$0xff]  ;;  %v465_v33 = vld [vmem:[#allocation11 + $0xa0] sm:$0xff]  ;;  %2246 = vmatpush1.bf16.msra.mxu0 %v3249_v26 }
  0x66   :  { %v3252_v35 = vpack.c.bf16 %v466_v31, %v462_v30  ;;  %v126_v36 = vld [vmem:[#allocation9 + $0xc8] sm:$0xff]  ;;  %v125_v38 = vld [vmem:[#allocation9 + $0xc0] sm:$0xff]  ;;  %2184 = vmatprep.subr.bf16.mxu1 %v2183_v27  ;;  %v3255_v39 = vpack.c.bf16 %v465_v33, %v461_v32 }
  0x67   :  { %v130_v37 = vld [vmem:[#allocation9 + $0xe8] sm:$0xff]  ;;  %v129_v41 = vld [vmem:[#allocation9 + $0xe0] sm:$0xff]  ;;  %2186 = vmatpush1.bf16.msra.mxu1 %v2185_v34 }
  0x68   :  { %v2187_v40 = vpack.c.bf16 %v130_v37, %v126_v36  ;;  %v470_v42 = vld [vmem:[#allocation11 + $0xc8] sm:$0xff]  ;;  %2248 = vmatprep.subr.bf16.mxu0 %v3252_v35  ;;  %v469_v45 = vld [vmem:[#allocation11 + $0xc0] sm:$0xff]  ;;  %v2189_v49 = vpack.c.bf16 %v129_v41, %v125_v38  ;;  %v104_v37 = vld [vmem:[#allocation9 + $0x18] sm:$0xff] }
  0x69   :  { %v474_v43 = vld [vmem:[#allocation11 + $0xe8] sm:$0xff]  ;;  %v473_v46 = vld [vmem:[#allocation11 + $0xe0] sm:$0xff]  ;;  %2250 = vmatpush1.bf16.msra.mxu0 %v3255_v39  ;;  %v108_v38 = vld [vmem:[#allocation9 + $0x38] sm:$0xff] }
  0x6a   :  { %v3258_v44 = vpack.c.bf16 %v474_v43, %v470_v42  ;;  %v134_v47 = vld [vmem:[#allocation9 + $0x108] sm:$0xff]  ;;  %2188 = vmatprep.subr.bf16.mxu1 %v2187_v40  ;;  %v3261_v52 = vpack.c.bf16 %v473_v46, %v469_v45  ;;  %v133_v54 = vld [vmem:[#allocation9 + $0x100] sm:$0xff]  ;;  %v2207_v42 = vpack.c.bf16 %v108_v38, %v104_v37  ;;  %v103_v43 = vld [vmem:[#allocation9 + $0x10] sm:$0xff] }
  0x6b   :  { %v138_v48 = vld [vmem:[#allocation9 + $0x128] sm:$0xff]  ;;  %v137_v55 = vld [vmem:[#allocation9 + $0x120] sm:$0xff]  ;;  %2190 = vmatpush1.bf16.msra.mxu1 %v2189_v49  ;;  %v107_v45 = vld [vmem:[#allocation9 + $0x30] sm:$0xff] }
  0x6c   :  { %v478_v50 = vld [vmem:[#allocation11 + $0x108] sm:$0xff]  ;;  %v2191_v53 = vpack.c.bf16 %v138_v48, %v134_v47  ;;  %v477_v56 = vld [vmem:[#allocation11 + $0x100] sm:$0xff]  ;;  %2252 = vmatprep.subr.bf16.mxu0 %v3258_v44  ;;  %v2193_v63 = vpack.c.bf16 %v137_v55, %v133_v54  ;;  %v112_v46 = vld [vmem:[#allocation9 + $0x58] sm:$0xff]  ;;  %v2209_v49 = vpack.c.bf16 %v107_v45, %v103_v43 }
  0x6d   :  { %v482_v51 = vld [vmem:[#allocation11 + $0x128] sm:$0xff]  ;;  %v481_v58 = vld [vmem:[#allocation11 + $0x120] sm:$0xff]  ;;  %2254 = vmatpush1.bf16.msra.mxu0 %v3261_v52  ;;  %v116_v47 = vld [vmem:[#allocation9 + $0x78] sm:$0xff] }
  0x6e   :  { %v3264_v57 = vpack.c.bf16 %v482_v51, %v478_v50  ;;  %v142_v59 = vld [vmem:[#allocation9 + $0x148] sm:$0xff]  ;;  %2192 = vmatprep.subr.bf16.mxu1 %v2191_v53  ;;  %v3267_v1 = vpack.c.bf16 %v481_v58, %v477_v56  ;;  %v141_v3 = vld [vmem:[#allocation9 + $0x140] sm:$0xff]  ;;  %v2211_v50 = vpack.c.bf16 %v116_v47, %v112_v46  ;;  %v111_v51 = vld [vmem:[#allocation9 + $0x50] sm:$0xff] }
  0x6f   :  { %v146_v60 = vld [vmem:[#allocation9 + $0x168] sm:$0xff]  ;;  %v145_v4 = vld [vmem:[#allocation9 + $0x160] sm:$0xff]  ;;  %2194 = vmatpush1.bf16.msra.mxu1 %v2193_v63  ;;  %v115_v53 = vld [vmem:[#allocation9 + $0x70] sm:$0xff] }
  0x70   :  { %v486_v61 = vld [vmem:[#allocation11 + $0x148] sm:$0xff]  ;;  %v2195_v2 = vpack.c.bf16 %v146_v60, %v142_v59  ;;  %v485_v5 = vld [vmem:[#allocation11 + $0x140] sm:$0xff]  ;;  %2256 = vmatprep.subr.bf16.mxu0 %v3264_v57  ;;  %v2197_v14 = vpack.c.bf16 %v145_v4, %v141_v3  ;;  %v120_v54 = vld [vmem:[#allocation9 + $0x98] sm:$0xff]  ;;  %v2213_v58 = vpack.c.bf16 %v115_v53, %v111_v51 }
  0x71   :  { %v490_v62 = vld [vmem:[#allocation11 + $0x168] sm:$0xff]  ;;  %v489_v7 = vld [vmem:[#allocation11 + $0x160] sm:$0xff]  ;;  %2258 = vmatpush1.bf16.msra.mxu0 %v3267_v1  ;;  %v124_v55 = vld [vmem:[#allocation9 + $0xb8] sm:$0xff] }
  0x72   :  { %v3270_v6 = vpack.c.bf16 %v490_v62, %v486_v61  ;;  %v150_v8 = vld [vmem:[#allocation9 + $0x188] sm:$0xff]  ;;  %2196 = vmatprep.subr.bf16.mxu1 %v2195_v2  ;;  %v3273_v15 = vpack.c.bf16 %v489_v7, %v485_v5  ;;  %v149_v17 = vld [vmem:[#allocation9 + $0x180] sm:$0xff]  ;;  %v2215_v59 = vpack.c.bf16 %v124_v55, %v120_v54  ;;  %v119_v60 = vld [vmem:[#allocation9 + $0x90] sm:$0xff] }
  0x73   :  { %v154_v10 = vld [vmem:[#allocation9 + $0x1a8] sm:$0xff]  ;;  %v153_v18 = vld [vmem:[#allocation9 + $0x1a0] sm:$0xff]  ;;  %2198 = vmatpush1.bf16.msra.mxu1 %v2197_v14  ;;  %v123_v61 = vld [vmem:[#allocation9 + $0xb0] sm:$0xff] }
  0x74   :  { %v494_v11 = vld [vmem:[#allocation11 + $0x188] sm:$0xff]  ;;  %v2199_v16 = vpack.c.bf16 %v154_v10, %v150_v8  ;;  %v493_v19 = vld [vmem:[#allocation11 + $0x180] sm:$0xff]  ;;  %2260 = vmatprep.subr.bf16.mxu0 %v3270_v6  ;;  %v2201_v28 = vpack.c.bf16 %v153_v18, %v149_v17  ;;  %v128_v62 = vld [vmem:[#allocation9 + $0xd8] sm:$0xff]  ;;  %v2217_v3 = vpack.c.bf16 %v123_v61, %v119_v60 }
  0x75   :  { %v498_v12 = vld [vmem:[#allocation11 + $0x1a8] sm:$0xff]  ;;  %v497_v21 = vld [vmem:[#allocation11 + $0x1a0] sm:$0xff]  ;;  %2262 = vmatpush1.bf16.msra.mxu0 %v3273_v15  ;;  %v132_v63 = vld [vmem:[#allocation9 + $0xf8] sm:$0xff] }
  0x76   :  { %v3276_v20 = vpack.c.bf16 %v498_v12, %v494_v11  ;;  %v158_v23 = vld [vmem:[#allocation9 + $0x1c8] sm:$0xff]  ;;  %2200 = vmatprep.subr.bf16.mxu1 %v2199_v16  ;;  %v3279_v29 = vpack.c.bf16 %v497_v21, %v493_v19  ;;  %v157_v31 = vld [vmem:[#allocation9 + $0x1c0] sm:$0xff]  ;;  %v3302_v2 = vld [vmem:[#allocation6 + $0x10] sm:$0xff]  ;;  %v2219_v4 = vpack.c.bf16 %v132_v63, %v128_v62 }
  0x77   :  { %v162_v24 = vld [vmem:[#allocation9 + $0x1e8] sm:$0xff]  ;;  %v161_v32 = vld [vmem:[#allocation9 + $0x1e0] sm:$0xff]  ;;  %2202 = vmatpush1.bf16.msra.mxu1 %v2201_v28  ;;  %v127_v5 = vld [vmem:[#allocation9 + $0xd0] sm:$0xff] }
  0x78   :  { %v502_v25 = vld [vmem:[#allocation11 + $0x1c8] sm:$0xff]  ;;  %v2203_v30 = vpack.c.bf16 %v162_v24, %v158_v23  ;;  %v501_v33 = vld [vmem:[#allocation11 + $0x1c0] sm:$0xff]  ;;  %2264 = vmatprep.subr.bf16.mxu0 %v3276_v20  ;;  %v2205_v40 = vpack.c.bf16 %v161_v32, %v157_v31  ;;  %v131_v7 = vld [vmem:[#allocation9 + $0xf0] sm:$0xff] }
  0x79   :  { %v506_v27 = vld [vmem:[#allocation11 + $0x1e8] sm:$0xff]  ;;  %v505_v36 = vld [vmem:[#allocation11 + $0x1e0] sm:$0xff]  ;;  %2266 = vmatpush1.bf16.msra.mxu0 %v3279_v29  ;;  %v136_v8 = vld [vmem:[#allocation9 + $0x118] sm:$0xff]  ;;  %v2221_v12 = vpack.c.bf16 %v131_v7, %v127_v5 }
  0x7a   :  { %v3282_v34 = vpack.c.bf16 %v506_v27, %v502_v25  ;;  %2204 = vmatprep.subr.bf16.mxu1 %v2203_v30  ;;  %v3285_v41 = vpack.c.bf16 %v505_v36, %v501_v33  ;;  %v3288_v48 = vld [vmem:[#allocation6] sm:$0xff]  ;;  %v3294_v56 = vld [vmem:[#allocation6 + $0x8] sm:$0xff]  ;;  %v140_v10 = vld [vmem:[#allocation9 + $0x138] sm:$0xff] }
  0x7b   :  { %2206 = vmatpush1.bf16.msra.mxu1 %v2205_v40  ;;  %v3308_v11 = vld [vmem:[#allocation6 + $0x18] sm:$0xff]  ;;  %v2223_v14 = vpack.c.bf16 %v140_v10, %v136_v8  ;;  %v135_v16 = vld [vmem:[#allocation9 + $0x110] sm:$0xff]  ;;  %v3314_v21 = vld [vmem:[#allocation6 + $0x20] sm:$0xff] }
  0x7c   :  { %2268 = vmatprep.subr.bf16.mxu0 %v3282_v34  ;;  %2208 = vmatprep.subr.bf16.mxu1 %v2207_v42  ;;  %v139_v17 = vld [vmem:[#allocation9 + $0x130] sm:$0xff]  ;;  %v144_v18 = vld [vmem:[#allocation9 + $0x158] sm:$0xff]  ;;  %v3320_v31 = vld [vmem:[#allocation6 + $0x28] sm:$0xff] }
  0x7d   :  { %2270 = vmatpush1.bf16.msra.mxu0 %v3285_v41  ;;  %v148_v19 = vld [vmem:[#allocation9 + $0x178] sm:$0xff]  ;;  %v2225_v23 = vpack.c.bf16 %v139_v17, %v135_v16  ;;  %v143_v25 = vld [vmem:[#allocation9 + $0x150] sm:$0xff] }
  0x7e   :  { %2304 = vmatprep.subr.bf16.mxu0 %v3241_v9  ;;  %252 = vmatmul.mubr.f32.vlgmr.msra.gmra.mrb[0].mxu1 %v3288_v48  ;;  %v2227_v24 = vpack.c.bf16 %v148_v19, %v144_v18  ;;  %v147_v27 = vld [vmem:[#allocation9 + $0x170] sm:$0xff]  ;;  %v152_v28 = vld [vmem:[#allocation9 + $0x198] sm:$0xff] }
  0x7f   :  { %2210 = vmatpush1.bf16.msra.mxu1 %v2209_v49  ;;  %257 = vmatprep.mubr.f32.mxu1 %v3766_v0  ;;  %v156_v30 = vld [vmem:[#allocation9 + $0x1b8] sm:$0xff]  ;;  %v2229_v32 = vpack.c.bf16 %v147_v27, %v143_v25  ;;  %v151_v36 = vld [vmem:[#allocation9 + $0x190] sm:$0xff] }
  0x80   :  { %580 = vmatmul.mubr.f32.vlgmr.msra.gmra.mrb[0].mxu0 %v3766_v0  ;;  %2212 = vmatprep.subr.bf16.mxu1 %v2211_v50  ;;  %v2231_v33 = vpack.c.bf16 %v156_v30, %v152_v28  ;;  %v155_v37 = vld [vmem:[#allocation9 + $0x1b0] sm:$0xff]  ;;  %v160_v38 = vld [vmem:[#allocation9 + $0x1d8] sm:$0xff] }
  0x81   :  { %2306 = vmatpush1.bf16.msra.mxu0 %v3243_v13  ;;  %755 = vmatprep.mubr.f32.mxu0 %v3766_v0  ;;  %v164_v40 = vld [vmem:[#allocation9 + $0x1f8] sm:$0xff]  ;;  %v3326_v42 = vld [vmem:[#allocation6 + $0x30] sm:$0xff]  ;;  %v2233_v43 = vpack.c.bf16 %v155_v37, %v151_v36 }
  0x82   :  { %258 = vmatmul.mubr.f32.gmra.mrb[2].mxu1 %v3294_v56  ;;  %2308 = vmatprep.subr.bf16.mxu0 %v3247_v22  ;;  %v2235_v45 = vpack.c.bf16 %v164_v40, %v160_v38  ;;  %v159_v46 = vld [vmem:[#allocation9 + $0x1d0] sm:$0xff]  ;;  %v448_v49 = vld [vmem:[#allocation11 + $0x18] sm:$0xff] }
  0x83   :  { %2214 = vmatpush1.bf16.msra.mxu1 %v2213_v58  ;;  %263 = vmatprep.mubr.f32.mxu1 %v3766_v0  ;;  %v163_v47 = vld [vmem:[#allocation9 + $0x1f0] sm:$0xff]  ;;  %v452_v50 = vld [vmem:[#allocation11 + $0x38] sm:$0xff] }
  0x84   :  { %2216 = vmatprep.subr.bf16.mxu1 %v2215_v59  ;;  %v3332_v51 = vld [vmem:[#allocation6 + $0x38] sm:$0xff]  ;;  %v2237_v53 = vpack.c.bf16 %v163_v47, %v159_v46  ;;  %v3334_v54 = vpack.c.bf16 %v452_v50, %v448_v49  ;;  %v447_v55 = vld [vmem:[#allocation11 + $0x10] sm:$0xff] }
  0x85   :  { %2310 = vmatpush1.bf16.msra.mxu0 %v3249_v26  ;;  %v451_v58 = vld [vmem:[#allocation11 + $0x30] sm:$0xff]  ;;  %v456_v59 = vld [vmem:[#allocation11 + $0x58] sm:$0xff] }
  0x86   :  { %264 = vmatmul.mubr.f32.gmra.mrb[4].mxu1 %v3302_v2  ;;  %2312 = vmatprep.subr.bf16.mxu0 %v3252_v35  ;;  %v460_v60 = vld [vmem:[#allocation11 + $0x78] sm:$0xff]  ;;  %v3340_v61 = vpack.c.bf16 %v451_v58, %v447_v55  ;;  %v455_v63 = vld [vmem:[#allocation11 + $0x50] sm:$0xff] }
  0x87   :  { %2218 = vmatpush1.bf16.msra.mxu1 %v2217_v3  ;;  %269 = vmatprep.mubr.f32.mxu1 %v3766_v0  ;;  %v3343_v62 = vpack.c.bf16 %v460_v60, %v456_v59  ;;  %v459_v3 = vld [vmem:[#allocation11 + $0x70] sm:$0xff]  ;;  %v468_v5 = vld [vmem:[#allocation11 + $0xb8] sm:$0xff]  ;;  %v165_v59 = vld [vmem:[#allocation12] sm:$0xf] }
  0x88   :  { %2220 = vmatprep.subr.bf16.mxu1 %v2219_v4  ;;  %v464_v4 = vld [vmem:[#allocation11 + $0x98] sm:$0xff]  ;;  %v3350_v7 = vpack.c.bf16 %v459_v3, %v455_v63  ;;  %v463_v10 = vld [vmem:[#allocation11 + $0x90] sm:$0xff] }
  0x89   :  { %2314 = vmatpush1.bf16.msra.mxu0 %v3255_v39  ;;  %v3353_v8 = vpack.c.bf16 %v468_v5, %v464_v4  ;;  %v476_v16 = vld [vmem:[#allocation11 + $0xf8] sm:$0xff]  ;;  %v471_v18 = vld [vmem:[#allocation11 + $0xd0] sm:$0xff] }
  0x8a   :  { %270 = vmatmul.mubr.f32.gmra.mrb[6].mxu1 %v3308_v11  ;;  %2316 = vmatprep.subr.bf16.mxu0 %v3258_v44  ;;  %v475_v19 = vld [vmem:[#allocation11 + $0xf0] sm:$0xff]  ;;  %v488_v30 = vld [vmem:[#allocation11 + $0x158] sm:$0xff] }
  0x8b   :  { %2222 = vmatpush1.bf16.msra.mxu1 %v2221_v12  ;;  %275 = vmatprep.mubr.f32.mxu1 %v3766_v0  ;;  %v467_v12 = vld [vmem:[#allocation11 + $0xb0] sm:$0xff]  ;;  %v496_v38 = vld [vmem:[#allocation11 + $0x198] sm:$0xff] }
  0x8c   :  { %2224 = vmatprep.subr.bf16.mxu1 %v2223_v14  ;;  %v472_v14 = vld [vmem:[#allocation11 + $0xd8] sm:$0xff]  ;;  %v479_v27 = vld [vmem:[#allocation11 + $0x110] sm:$0xff] }
  0x8d   :  { %2318 = vmatpush1.bf16.msra.mxu0 %v3261_v52  ;;  %v3361_v17 = vpack.c.bf16 %v476_v16, %v472_v14  ;;  %v483_v28 = vld [vmem:[#allocation11 + $0x130] sm:$0xff]  ;;  %v500_v40 = vld [vmem:[#allocation11 + $0x1b8] sm:$0xff] }
  0x8e   :  { %276 = vmatmul.mubr.f32.gmra.mrb[8].mxu1 %v3314_v21  ;;  %2320 = vmatprep.subr.bf16.mxu0 %v3264_v57  ;;  %v487_v36 = vld [vmem:[#allocation11 + $0x150] sm:$0xff]  ;;  %v504_v47 = vld [vmem:[#allocation11 + $0x1d8] sm:$0xff] }
  0x8f   :  { %2226 = vmatpush1.bf16.msra.mxu1 %v2225_v23  ;;  %281 = vmatprep.mubr.f32.mxu1 %v3766_v0  ;;  %v480_v23 = vld [vmem:[#allocation11 + $0x118] sm:$0xff]  ;;  %v491_v37 = vld [vmem:[#allocation11 + $0x170] sm:$0xff] }
  0x90   :  { %2228 = vmatprep.subr.bf16.mxu1 %v2227_v24  ;;  %v484_v24 = vld [vmem:[#allocation11 + $0x138] sm:$0xff]  ;;  %v499_v46 = vld [vmem:[#allocation11 + $0x1b0] sm:$0xff] }
  0x91   :  { %2322 = vmatpush1.bf16.msra.mxu0 %v3267_v1  ;;  %v3369_v25 = vpack.c.bf16 %v484_v24, %v480_v23  ;;  %v508_v49 = vld [vmem:[#allocation11 + $0x1f8] sm:$0xff]  ;;  %v507_v55 = vld [vmem:[#allocation11 + $0x1f0] sm:$0xff] }
  0x92   :  { %282 = vmatmul.mubr.f32.gmra.mrb[10].mxu1 %v3320_v31  ;;  %2324 = vmatprep.subr.bf16.mxu0 %v3270_v6  ;;  %v3393_v50 = vpack.c.bf16 %v508_v49, %v504_v47 }
  0x93   :  { %2230 = vmatpush1.bf16.msra.mxu1 %v2229_v32  ;;  %287 = vmatprep.mubr.f32.mxu1 %v3766_v0  ;;  %v492_v32 = vld [vmem:[#allocation11 + $0x178] sm:$0xff] }
  0x94   :  { %2232 = vmatprep.subr.bf16.mxu1 %v2231_v33  ;;  %v3377_v33 = vpack.c.bf16 %v492_v32, %v488_v30 }
  0x95   :  { %2326 = vmatpush1.bf16.msra.mxu0 %v3273_v15 }
  0x96   :  { %288 = vmatmul.mubr.f32.gmra.mrb[12].mxu1 %v3326_v42  ;;  %2328 = vmatprep.subr.bf16.mxu0 %v3276_v20 }
  0x97   :  { %2234 = vmatpush1.bf16.msra.mxu1 %v2233_v43  ;;  %293 = vmatprep.mubr.f32.mxu1 %v3766_v0  ;;  %v3385_v43 = vpack.c.bf16 %v500_v40, %v496_v38 }
  0x98   :  { %2236 = vmatprep.subr.bf16.mxu1 %v2235_v45  ;;  %v495_v45 = vld [vmem:[#allocation11 + $0x190] sm:$0xff] }
  0x99   :  { %2330 = vmatpush1.bf16.msra.mxu0 %v3279_v29 }
  0x9a   :  { %294 = vmatmul.mubr.f32.gmra.mrb[14].mxu1 %v3332_v51  ;;  %2332 = vmatprep.subr.bf16.mxu0 %v3282_v34 }
  0x9b   :  { %2238 = vmatpush1.bf16.msra.mxu1 %v2237_v53  ;;  %364 = vmatprep.mubr.f32.mxu1 %v3766_v0  ;;  %v503_v53 = vld [vmem:[#allocation11 + $0x1d0] sm:$0xff] }
  0x9c   :  { %2272 = vmatprep.subr.bf16.mxu1 %v3334_v54  ;;  %v3398_v58 = vpack.c.bf16 %v507_v55, %v503_v53 }
  0x9d   :  { %2334 = vmatpush1.bf16.msra.mxu0 %v3285_v41 }
  0x9e   :  { %365 = vmatmul.mubr.f32.vlgmr.msra.gmra.mrb[16].mxu1 %v3288_v48  ;;  %2368 = vmatprep.subr.bf16.mxu0 %v3241_v9  ;;  %v3358_v48 = vpack.c.bf16 %v467_v12, %v463_v10 }
  0x9f   :  { %2274 = vmatpush1.bf16.msra.mxu1 %v3340_v61  ;;  %370 = vmatprep.mubr.f32.mxu1 %v3766_v0 }
  0xa0   :  { %2276 = vmatprep.subr.bf16.mxu1 %v3343_v62 }
  0xa2   :  { %371 = vmatmul.mubr.f32.gmra.mrb[18].mxu1 %v3294_v56  ;;  %v3366_v56 = vpack.c.bf16 %v475_v19, %v471_v18 }
  0xa3   :  { %2278 = vmatpush1.bf16.msra.mxu1 %v3350_v7  ;;  %376 = vmatprep.mubr.f32.mxu1 %v3766_v0 }
  0xa4   :  { %2280 = vmatprep.subr.bf16.mxu1 %v3353_v8 }
  0xa6   :  { %377 = vmatmul.mubr.f32.gmra.mrb[20].mxu1 %v3302_v2  ;;  %v3374_v2 = vpack.c.bf16 %v483_v28, %v479_v27 }
  0xa7   :  { %2282 = vmatpush1.bf16.msra.mxu1 %v3358_v48  ;;  %382 = vmatprep.mubr.f32.mxu1 %v3766_v0 }
  0xa8   :  { %2284 = vmatprep.subr.bf16.mxu1 %v3361_v17 }
  0xaa   :  { %383 = vmatmul.mubr.f32.gmra.mrb[22].mxu1 %v3308_v11  ;;  %v3382_v11 = vpack.c.bf16 %v491_v37, %v487_v36 }
  0xab   :  { %2286 = vmatpush1.bf16.msra.mxu1 %v3366_v56  ;;  %388 = vmatprep.mubr.f32.mxu1 %v3766_v0 }
  0xac   :  { %2288 = vmatprep.subr.bf16.mxu1 %v3369_v25 }
  0xae   :  { %389 = vmatmul.mubr.f32.gmra.mrb[24].mxu1 %v3314_v21  ;;  %v3390_v21 = vpack.c.bf16 %v499_v46, %v495_v45 }
  0xaf   :  { %2290 = vmatpush1.bf16.msra.mxu1 %v3374_v2  ;;  %394 = vmatprep.mubr.f32.mxu1 %v3766_v0 }
  0xb0   :  { %2292 = vmatprep.subr.bf16.mxu1 %v3377_v33 }
  0xb2   :  { %395 = vmatmul.mubr.f32.gmra.mrb[26].mxu1 %v3320_v31  ;;  %v167_v31 = vlaneseq }
  0xb3   :  { %2294 = vmatpush1.bf16.msra.mxu1 %v3382_v11  ;;  %400 = vmatprep.mubr.f32.mxu1 %v3766_v0 }
  0xb4   :  { %2296 = vmatprep.subr.bf16.mxu1 %v3385_v43 }
  0xb6   :  { %401 = vmatmul.mubr.f32.gmra.mrb[28].mxu1 %v3326_v42  ;;  %v168_v42 = vshrl.u32 %v167_v31, 7 }
  0xb7   :  { %2298 = vmatpush1.bf16.msra.mxu1 %v3390_v21  ;;  %406 = vmatprep.mubr.f32.mxu1 %v3766_v0 }
  0xb8   :  { %2300 = vmatprep.subr.bf16.mxu1 %v3393_v50  ;;  %v173_v60 = vsub.s32 1, %v168_v42 }
  0xba   :  { %407 = vmatmul.mubr.f32.gmra.mrb[30].mxu1 %v3332_v51  ;;  %v169_v51 = vsub.s32 0, %v168_v42  ;;  %v174_v3 = vrot.slane %v165_v59, %v173_v60 }
  0xbb   :  { %2302 = vmatpush1.bf16.msra.mxu1 %v3398_v58  ;;  %650 = vmatprep.mubr.f32.mxu1 %v3766_v0 }
  0xbc   :  { %2336 = vmatprep.subr.bf16.mxu1 %v3334_v54  ;;  %v170_v63 = vrot.slane %v165_v59, %v169_v51 }
  0xbe   :  { %651 = vmatmul.mubr.f32.vlgmr.msra.gmra.mrb[16].mxu1 %v3766_v0 }
  0xbf   :  { %2338 = vmatpush1.bf16.msra.mxu1 %v3340_v61  ;;  %826 = vmatprep.mubr.f32.mxu1 %v3766_v0 }
  0xc0   :  { %2340 = vmatprep.subr.bf16.mxu1 %v3343_v62 }
  0xc3   :  { %2342 = vmatpush1.bf16.msra.mxu1 %v3350_v7 }
  0xc4   :  { %2344 = vmatprep.subr.bf16.mxu1 %v3353_v8 }
  0xc7   :  { %2346 = vmatpush1.bf16.msra.mxu1 %v3358_v48 }
  0xc8   :  { %2348 = vmatprep.subr.bf16.mxu1 %v3361_v17 }
  0xcb   :  { %2350 = vmatpush1.bf16.msra.mxu1 %v3366_v56 }
  0xcc   :  { %2352 = vmatprep.subr.bf16.mxu1 %v3369_v25 }
  0xcf   :  { %2354 = vmatpush1.bf16.msra.mxu1 %v3374_v2 }
  0xd0   :  { %2356 = vmatprep.subr.bf16.mxu1 %v3377_v33 }
  0xd3   :  { %2358 = vmatpush1.bf16.msra.mxu1 %v3382_v11 }
  0xd4   :  { %2360 = vmatprep.subr.bf16.mxu1 %v3385_v43 }
  0xd7   :  { %2362 = vmatpush1.bf16.msra.mxu1 %v3390_v21 }
  0xd8   :  { %2364 = vmatprep.subr.bf16.mxu1 %v3393_v50 }
  0xdb   :  { %2366 = vmatpush1.bf16.msra.mxu1 %v3398_v58 }
  0xdc   :  { %2400 = vmatprep.subr.bf16.mxu1 %v3334_v54 }
 0x151   :  { %v253_v4 = vpop.f32.mrb[0].mxu1 }
 0x152   :  { %v254_v5 = vadd.f32 %v253_v4, %v170_v63  ;;  %v255_v10 = vpop.f32.mrb[1].mxu1 }
 0x153   :  { %v581_v12 = vpop.f32.mrb[0].mxu0  ;;  %v256_v14 = vadd.f32 %v255_v10, %v174_v3 }
 0x154   :  { %v583_v16 = vpop.f32.mrb[1].mxu0  ;;  %v657_v18 = vadd.f32 %v581_v12, %v254_v5 }
 0x155   :  { %v658_v19 = vadd.f32 %v583_v16, %v256_v14  ;;  %v259_v23 = vpop.f32.mrb[2].mxu1 }
 0x156   :  { %v3423_v24 = vadd.f32 %v259_v23, %v170_v63  ;;  %v261_v27 = vpop.f32.mrb[3].mxu1 }
 0x157   :  { %v3425_v28 = vadd.f32 %v261_v27, %v174_v3 }
 0x159   :  { %v265_v30 = vpop.f32.mrb[4].mxu1 }
 0x15a   :  { %v3427_v32 = vadd.f32 %v265_v30, %v170_v63  ;;  %v267_v36 = vpop.f32.mrb[5].mxu1 }
 0x15b   :  { %v3429_v37 = vadd.f32 %v267_v36, %v174_v3  ;;  %v2084_v36 = vmul.f32 -1.442695, %v658_v19 }
 0x15d   :  { %v271_v38 = vpop.f32.mrb[6].mxu1  ;;  %2858 = vpow2.f32 %v2084_v36 }
 0x15e   :  { %v3431_v40 = vadd.f32 %v271_v38, %v170_v63  ;;  %v273_v45 = vpop.f32.mrb[7].mxu1  ;;  %v2083_v38 = vmul.f32 -1.442695, %v657_v18 }
 0x15f   :  { %v3433_v46 = vadd.f32 %v273_v45, %v174_v3  ;;  %v177_v45 = vsub.s32 2, %v168_v42 }
 0x160   :  { %2860 = vpow2.f32 %v2083_v38 }
 0x161   :  { %v277_v47 = vpop.f32.mrb[8].mxu1 }
 0x162   :  { %v3435_v49 = vadd.f32 %v277_v47, %v170_v63  ;;  %v279_v53 = vpop.f32.mrb[9].mxu1 }
 0x163   :  { %v3437_v55 = vadd.f32 %v279_v53, %v174_v3  ;;  %v181_v53 = vsub.s32 3, %v168_v42 }
 0x165   :  { %v283_v31 = vpop.f32.mrb[10].mxu1 }
 0x166   :  { %v3439_v51 = vadd.f32 %v283_v31, %v170_v63  ;;  %v285_v60 = vpop.f32.mrb[11].mxu1 }
 0x167   :  { %v3441_v4 = vadd.f32 %v285_v60, %v174_v3  ;;  %v2859_v47 = vpop.eup %2858 }
 0x168   :  { %v670_v60 = vadd.f32 1.0, %v2859_v47 }
 0x169   :  { %v289_v5 = vpop.f32.mrb[12].mxu1 }
 0x16a   :  { %v3443_v10 = vadd.f32 %v289_v5, %v170_v63  ;;  %v291_v12 = vpop.f32.mrb[13].mxu1  ;;  %v2861_v31 = vpop.eup %2860  ;;  %v3451_v5 = vrot.slane %v165_v59, %v177_v45  ;;  %2862 = vrcp.f32 %v670_v60 }
 0x16b   :  { %v3445_v14 = vadd.f32 %v291_v12, %v174_v3  ;;  %v664_v0 = vadd.f32 1.0, %v2861_v31  ;;  %v3453_v12 = vrot.slane %v165_v59, %v181_v53  ;;  %v3770_v31 = vmov 0.0  }
 0x16d   :  { %3768 = vst [vmem:[#allocation20_spill] sm:$0xff] %v3445_v14  ;;  %v295_v16 = vpop.f32.mrb[14].mxu1  ;;  %2864 = vrcp.f32 %v664_v0 }
 0x16e   :  { %v3447_v23 = vadd.f32 %v295_v16, %v170_v63  ;;  %v297_v27 = vpop.f32.mrb[15].mxu1 }
 0x16f   :  { %v3449_v30 = vadd.f32 %v297_v27, %v174_v3 }
 0x171   :  { %3769 = vst [vmem:[#allocation21_spill] sm:$0xff] %v3449_v30 }
 0x174   :  { %v2863_v16 = vpop.eup %2862 }
 0x175   :  { %v680_v36 = vmul.f32 0.0, %v2863_v16 }
 0x177   :  { %v2865_v42 = vpop.eup %2864 }
 0x191   :  { %v652_v14 = vpop.f32.mrb[16].mxu1 }
 0x192   :  { %v2815_v63 = vadd.f32 %v652_v14, %v3451_v5  ;;  %v654_v3 = vpop.f32.mrb[17].mxu1 }
 0x193   :  { %v2816_v18 = vadd.f32 %v654_v3, %v3453_v12 }
 0x194   :  { %2866 = vtanh.f32 %v2815_v63 }
 0x195   :  { %v2085_v19 = vmul.f32 -1.442695, %v2816_v18 }
 0x197   :  { %2868 = vpow2.f32 %v2085_v19 }
 0x19e   :  { %v2867_v27 = vpop.eup %2866 }
 0x19f   :  { %v681_v38 = vmul.f32 %v2867_v27, %v2865_v42 }
 0x1a1   :  { %v2869_v45 = vpop.eup %2868  ;;  %v3457_v47 = vadd.f32 %v681_v38, %v680_v36 }
 0x1a2   :  { %v677_v59 = vadd.f32 1.0, %v2869_v45 }
 0x1a3   :  { %2870 = vtanh.f32 %v3457_v47 }
 0x1a4   :  { %2872 = vrcp.f32 %v677_v59 }
 0x1ad   :  { %v2871_v14 = vpop.eup %2870 }
 0x1ae   :  { %v2873_v53 = vpop.eup %2872 }
 0x1af   :  { %v3460_v0 = vmul.f32 %v2873_v53, %v2871_v14 }
 0x1b1   :  { %756 = vmatmul.mubr.f32.vlgmr.msra.gmra.mrb[2].mxu0 %v3460_v0  ;;  %827 = vmatmul.mubr.f32.vlgmr.msra.gmra.mrb[18].mxu1 %v3460_v0 }
 0x1b2   :  { %2370 = vmatpush1.bf16.msra.mxu0 %v3243_v13  ;;  %2402 = vmatpush1.bf16.msra.mxu1 %v3340_v61 }
 0x1b3   :  { %2372 = vmatprep.subr.bf16.mxu0 %v3247_v22  ;;  %2404 = vmatprep.subr.bf16.mxu1 %v3343_v62 }
 0x1b4   :  { %932 = vmatprep.mubr.f32.mxu0 %v3770_v31  ;;  %1003 = vmatprep.mubr.f32.mxu1 %v3770_v31 }
 0x1b6   :  { %2374 = vmatpush1.bf16.msra.mxu0 %v3249_v26  ;;  %2406 = vmatpush1.bf16.msra.mxu1 %v3350_v7 }
 0x1b7   :  { %2376 = vmatprep.subr.bf16.mxu0 %v3252_v35  ;;  %2408 = vmatprep.subr.bf16.mxu1 %v3353_v8 }
 0x1ba   :  { %2378 = vmatpush1.bf16.msra.mxu0 %v3255_v39  ;;  %2410 = vmatpush1.bf16.msra.mxu1 %v3358_v48 }
 0x1bb   :  { %2380 = vmatprep.subr.bf16.mxu0 %v3258_v44  ;;  %2412 = vmatprep.subr.bf16.mxu1 %v3361_v17 }
 0x1be   :  { %2382 = vmatpush1.bf16.msra.mxu0 %v3261_v52  ;;  %2414 = vmatpush1.bf16.msra.mxu1 %v3366_v56 }
 0x1bf   :  { %2384 = vmatprep.subr.bf16.mxu0 %v3264_v57  ;;  %2416 = vmatprep.subr.bf16.mxu1 %v3369_v25 }
 0x1c2   :  { %2386 = vmatpush1.bf16.msra.mxu0 %v3267_v1  ;;  %2418 = vmatpush1.bf16.msra.mxu1 %v3374_v2 }
 0x1c3   :  { %2388 = vmatprep.subr.bf16.mxu0 %v3270_v6  ;;  %2420 = vmatprep.subr.bf16.mxu1 %v3377_v33 }
 0x1c6   :  { %2390 = vmatpush1.bf16.msra.mxu0 %v3273_v15  ;;  %2422 = vmatpush1.bf16.msra.mxu1 %v3382_v11 }
 0x1c7   :  { %2392 = vmatprep.subr.bf16.mxu0 %v3276_v20  ;;  %2424 = vmatprep.subr.bf16.mxu1 %v3385_v43 }
 0x1ca   :  { %2394 = vmatpush1.bf16.msra.mxu0 %v3279_v29  ;;  %2426 = vmatpush1.bf16.msra.mxu1 %v3390_v21 }
 0x1cb   :  { %2396 = vmatprep.subr.bf16.mxu0 %v3282_v34  ;;  %2428 = vmatprep.subr.bf16.mxu1 %v3393_v50 }
 0x1ce   :  { %2398 = vmatpush1.bf16.msra.mxu0 %v3285_v41  ;;  %2430 = vmatpush1.bf16.msra.mxu1 %v3398_v58 }
 0x1cf   :  { %2432 = vmatprep.subr.bf16.mxu0 %v3241_v9  ;;  %2464 = vmatprep.subr.bf16.mxu1 %v3334_v54 }
 0x284   :  { %v757_v60 = vpop.f32.mrb[2].mxu0  ;;  %v828_v63 = vpop.f32.mrb[18].mxu1 }
 0x285   :  { %v833_v3 = vadd.f32 %v757_v60, %v3423_v24  ;;  %v759_v18 = vpop.f32.mrb[3].mxu0  ;;  %v830_v19 = vpop.f32.mrb[19].mxu1  ;;  %v2817_v45 = vadd.f32 %v828_v63, %v3451_v5 }
 0x286   :  { %v834_v16 = vadd.f32 %v759_v18, %v3425_v28  ;;  %v2818_v36 = vadd.f32 %v830_v19, %v3453_v12 }
 0x287   :  { %v2086_v42 = vmul.f32 -1.442695, %v833_v3 }
 0x288   :  { %v2087_v27 = vmul.f32 -1.442695, %v834_v16  ;;  %v2088_v38 = vmul.f32 -1.442695, %v2818_v36 }
 0x289   :  { %2874 = vpow2.f32 %v2086_v42 }
 0x28a   :  { %2876 = vpow2.f32 %v2087_v27 }
 0x28b   :  { %2878 = vpow2.f32 %v2088_v38 }
 0x28c   :  { %2880 = vtanh.f32 %v2817_v45 }
 0x293   :  { %v2875_v59 = vpop.eup %2874 }
 0x294   :  { %v2877_v14 = vpop.eup %2876  ;;  %v840_v53 = vadd.f32 1.0, %v2875_v59 }
 0x295   :  { %v846_v30 = vadd.f32 1.0, %v2877_v14  ;;  %v2879_v24 = vpop.eup %2878 }
 0x296   :  { %2882 = vrcp.f32 %v840_v53  ;;  %v2881_v60 = vpop.eup %2880  ;;  %v853_v16 = vadd.f32 1.0, %v2879_v24 }
 0x297   :  { %2884 = vrcp.f32 %v846_v30 }
 0x298   :  { %2886 = vrcp.f32 %v853_v16 }
 0x2a0   :  { %v2883_v28 = vpop.eup %2882 }
 0x2a1   :  { %v2885_v3 = vpop.eup %2884  ;;  %v857_v18 = vmul.f32 %v2883_v28, %v2881_v60 }
 0x2a2   :  { %v856_v42 = vmul.f32 %v2885_v3, %v3457_v47  ;;  %v2887_v63 = vpop.eup %2886 }
 0x2a4   :  { %v3503_v19 = vadd.f32 %v857_v18, %v856_v42 }
 0x2a6   :  { %2888 = vtanh.f32 %v3503_v19 }
 0x2b0   :  { %v2889_v27 = vpop.eup %2888 }
 0x2b1   :  { %v3506_v36 = vmul.f32 %v2889_v27, %v2887_v63 }
 0x2b3   :  { %933 = vmatmul.mubr.f32.vlgmr.msra.gmra.mrb[4].mxu0 %v3506_v36  ;;  %1004 = vmatmul.mubr.f32.vlgmr.msra.gmra.mrb[20].mxu1 %v3506_v36 }
 0x2b4   :  { %2434 = vmatpush1.bf16.msra.mxu0 %v3243_v13  ;;  %2466 = vmatpush1.bf16.msra.mxu1 %v3340_v61 }
 0x2b5   :  { %2436 = vmatprep.subr.bf16.mxu0 %v3247_v22  ;;  %2468 = vmatprep.subr.bf16.mxu1 %v3343_v62 }
 0x2b6   :  { %1109 = vmatprep.mubr.f32.mxu0 %v3770_v31  ;;  %1180 = vmatprep.mubr.f32.mxu1 %v3770_v31 }
 0x2b8   :  { %2438 = vmatpush1.bf16.msra.mxu0 %v3249_v26  ;;  %2470 = vmatpush1.bf16.msra.mxu1 %v3350_v7 }
 0x2b9   :  { %2440 = vmatprep.subr.bf16.mxu0 %v3252_v35  ;;  %2472 = vmatprep.subr.bf16.mxu1 %v3353_v8 }
 0x2bc   :  { %2442 = vmatpush1.bf16.msra.mxu0 %v3255_v39  ;;  %2474 = vmatpush1.bf16.msra.mxu1 %v3358_v48 }
 0x2bd   :  { %2444 = vmatprep.subr.bf16.mxu0 %v3258_v44  ;;  %2476 = vmatprep.subr.bf16.mxu1 %v3361_v17 }
 0x2c0   :  { %2446 = vmatpush1.bf16.msra.mxu0 %v3261_v52  ;;  %2478 = vmatpush1.bf16.msra.mxu1 %v3366_v56 }
 0x2c1   :  { %2448 = vmatprep.subr.bf16.mxu0 %v3264_v57  ;;  %2480 = vmatprep.subr.bf16.mxu1 %v3369_v25 }
 0x2c4   :  { %2450 = vmatpush1.bf16.msra.mxu0 %v3267_v1  ;;  %2482 = vmatpush1.bf16.msra.mxu1 %v3374_v2 }
 0x2c5   :  { %2452 = vmatprep.subr.bf16.mxu0 %v3270_v6  ;;  %2484 = vmatprep.subr.bf16.mxu1 %v3377_v33 }
 0x2c8   :  { %2454 = vmatpush1.bf16.msra.mxu0 %v3273_v15  ;;  %2486 = vmatpush1.bf16.msra.mxu1 %v3382_v11 }
 0x2c9   :  { %2456 = vmatprep.subr.bf16.mxu0 %v3276_v20  ;;  %2488 = vmatprep.subr.bf16.mxu1 %v3385_v43 }
 0x2cc   :  { %2458 = vmatpush1.bf16.msra.mxu0 %v3279_v29  ;;  %2490 = vmatpush1.bf16.msra.mxu1 %v3390_v21 }
 0x2cd   :  { %2460 = vmatprep.subr.bf16.mxu0 %v3282_v34  ;;  %2492 = vmatprep.subr.bf16.mxu1 %v3393_v50 }
 0x2d0   :  { %2462 = vmatpush1.bf16.msra.mxu0 %v3285_v41  ;;  %2494 = vmatpush1.bf16.msra.mxu1 %v3398_v58 }
 0x2d1   :  { %2496 = vmatprep.subr.bf16.mxu0 %v3241_v9  ;;  %2528 = vmatprep.subr.bf16.mxu1 %v3334_v54 }
 0x386   :  { %v934_v30 = vpop.f32.mrb[4].mxu0  ;;  %v1005_v47 = vpop.f32.mrb[20].mxu1 }
 0x387   :  { %v1010_v38 = vadd.f32 %v934_v30, %v3427_v32  ;;  %v936_v45 = vpop.f32.mrb[5].mxu0  ;;  %v1007_v59 = vpop.f32.mrb[21].mxu1  ;;  %v2819_v3 = vadd.f32 %v1005_v47, %v3451_v5 }
 0x388   :  { %v1011_v14 = vadd.f32 %v936_v45, %v3429_v37  ;;  %v2820_v60 = vadd.f32 %v1007_v59, %v3453_v12 }
 0x389   :  { %v2089_v53 = vmul.f32 -1.442695, %v1010_v38 }
 0x38a   :  { %v2090_v24 = vmul.f32 -1.442695, %v1011_v14  ;;  %v2091_v28 = vmul.f32 -1.442695, %v2820_v60 }
 0x38b   :  { %2890 = vpow2.f32 %v2089_v53 }
 0x38c   :  { %2892 = vpow2.f32 %v2090_v24 }
 0x38d   :  { %2894 = vpow2.f32 %v2091_v28 }
 0x38e   :  { %2896 = vtanh.f32 %v2819_v3 }
 0x395   :  { %v2891_v18 = vpop.eup %2890 }
 0x396   :  { %v2893_v16 = vpop.eup %2892  ;;  %v1017_v42 = vadd.f32 1.0, %v2891_v18 }
 0x397   :  { %v1023_v63 = vadd.f32 1.0, %v2893_v16  ;;  %v2895_v32 = vpop.eup %2894 }
 0x398   :  { %2898 = vrcp.f32 %v1017_v42  ;;  %v2897_v27 = vpop.eup %2896  ;;  %v1030_v45 = vadd.f32 1.0, %v2895_v32 }
 0x399   :  { %2900 = vrcp.f32 %v1023_v63 }
 0x39a   :  { %2902 = vrcp.f32 %v1030_v45 }
 0x3a2   :  { %v2899_v37 = vpop.eup %2898 }
 0x3a3   :  { %v2901_v30 = vpop.eup %2900  ;;  %v1034_v38 = vmul.f32 %v2899_v37, %v2897_v27 }
 0x3a4   :  { %v1033_v14 = vmul.f32 %v2901_v30, %v3503_v19  ;;  %v2903_v47 = vpop.eup %2902 }
 0x3a6   :  { %v3549_v59 = vadd.f32 %v1034_v38, %v1033_v14 }
 0x3a8   :  { %2904 = vtanh.f32 %v3549_v59 }
 0x3b2   :  { %v2905_v53 = vpop.eup %2904 }
 0x3b3   :  { %v3552_v24 = vmul.f32 %v2905_v53, %v2903_v47 }
 0x3b5   :  { %1110 = vmatmul.mubr.f32.vlgmr.msra.gmra.mrb[6].mxu0 %v3552_v24  ;;  %1181 = vmatmul.mubr.f32.vlgmr.msra.gmra.mrb[22].mxu1 %v3552_v24 }
 0x3b6   :  { %2498 = vmatpush1.bf16.msra.mxu0 %v3243_v13  ;;  %2530 = vmatpush1.bf16.msra.mxu1 %v3340_v61 }
 0x3b7   :  { %2500 = vmatprep.subr.bf16.mxu0 %v3247_v22  ;;  %2532 = vmatprep.subr.bf16.mxu1 %v3343_v62 }
 0x3b8   :  { %1286 = vmatprep.mubr.f32.mxu0 %v3770_v31  ;;  %1357 = vmatprep.mubr.f32.mxu1 %v3770_v31 }
 0x3ba   :  { %2502 = vmatpush1.bf16.msra.mxu0 %v3249_v26  ;;  %2534 = vmatpush1.bf16.msra.mxu1 %v3350_v7 }
 0x3bb   :  { %2504 = vmatprep.subr.bf16.mxu0 %v3252_v35  ;;  %2536 = vmatprep.subr.bf16.mxu1 %v3353_v8 }
 0x3be   :  { %2506 = vmatpush1.bf16.msra.mxu0 %v3255_v39  ;;  %2538 = vmatpush1.bf16.msra.mxu1 %v3358_v48 }
 0x3bf   :  { %2508 = vmatprep.subr.bf16.mxu0 %v3258_v44  ;;  %2540 = vmatprep.subr.bf16.mxu1 %v3361_v17 }
 0x3c2   :  { %2510 = vmatpush1.bf16.msra.mxu0 %v3261_v52  ;;  %2542 = vmatpush1.bf16.msra.mxu1 %v3366_v56 }
 0x3c3   :  { %2512 = vmatprep.subr.bf16.mxu0 %v3264_v57  ;;  %2544 = vmatprep.subr.bf16.mxu1 %v3369_v25 }
 0x3c6   :  { %2514 = vmatpush1.bf16.msra.mxu0 %v3267_v1  ;;  %2546 = vmatpush1.bf16.msra.mxu1 %v3374_v2 }
 0x3c7   :  { %2516 = vmatprep.subr.bf16.mxu0 %v3270_v6  ;;  %2548 = vmatprep.subr.bf16.mxu1 %v3377_v33 }
 0x3ca   :  { %2518 = vmatpush1.bf16.msra.mxu0 %v3273_v15  ;;  %2550 = vmatpush1.bf16.msra.mxu1 %v3382_v11 }
 0x3cb   :  { %2520 = vmatprep.subr.bf16.mxu0 %v3276_v20  ;;  %2552 = vmatprep.subr.bf16.mxu1 %v3385_v43 }
 0x3ce   :  { %2522 = vmatpush1.bf16.msra.mxu0 %v3279_v29  ;;  %2554 = vmatpush1.bf16.msra.mxu1 %v3390_v21 }
 0x3cf   :  { %2524 = vmatprep.subr.bf16.mxu0 %v3282_v34  ;;  %2556 = vmatprep.subr.bf16.mxu1 %v3393_v50 }
 0x3d2   :  { %2526 = vmatpush1.bf16.msra.mxu0 %v3285_v41  ;;  %2558 = vmatpush1.bf16.msra.mxu1 %v3398_v58 }
 0x3d3   :  { %2560 = vmatprep.subr.bf16.mxu0 %v3241_v9  ;;  %2592 = vmatprep.subr.bf16.mxu1 %v3334_v54 }
 0x488   :  { %v1111_v19 = vpop.f32.mrb[6].mxu0  ;;  %v1182_v60 = vpop.f32.mrb[22].mxu1 }
 0x489   :  { %v1187_v28 = vadd.f32 %v1111_v19, %v3431_v40  ;;  %v1113_v3 = vpop.f32.mrb[7].mxu0  ;;  %v1184_v18 = vpop.f32.mrb[23].mxu1  ;;  %v2821_v37 = vadd.f32 %v1182_v60, %v3451_v5 }
 0x48a   :  { %v1188_v16 = vadd.f32 %v1113_v3, %v3433_v46  ;;  %v2822_v32 = vadd.f32 %v1184_v18, %v3453_v12 }
 0x48b   :  { %v2092_v42 = vmul.f32 -1.442695, %v1187_v28 }
 0x48c   :  { %v2093_v63 = vmul.f32 -1.442695, %v1188_v16  ;;  %v2094_v27 = vmul.f32 -1.442695, %v2822_v32 }
 0x48d   :  { %2906 = vpow2.f32 %v2092_v42 }
 0x48e   :  { %2908 = vpow2.f32 %v2093_v63 }
 0x48f   :  { %2910 = vpow2.f32 %v2094_v27 }
 0x490   :  { %2912 = vtanh.f32 %v2821_v37 }
 0x497   :  { %v2907_v30 = vpop.eup %2906 }
 0x498   :  { %v2909_v38 = vpop.eup %2908  ;;  %v1194_v45 = vadd.f32 1.0, %v2907_v30 }
 0x499   :  { %v1200_v14 = vadd.f32 1.0, %v2909_v38  ;;  %v2911_v40 = vpop.eup %2910 }
 0x49a   :  { %2914 = vrcp.f32 %v1194_v45  ;;  %v2913_v47 = vpop.eup %2912  ;;  %v1207_v28 = vadd.f32 1.0, %v2911_v40 }
 0x49b   :  { %2916 = vrcp.f32 %v1200_v14 }
 0x49c   :  { %2918 = vrcp.f32 %v1207_v28 }
 0x4a4   :  { %v2915_v46 = vpop.eup %2914 }
 0x4a5   :  { %v2917_v53 = vpop.eup %2916  ;;  %v1211_v19 = vmul.f32 %v2915_v46, %v2913_v47 }
 0x4a6   :  { %v1210_v3 = vmul.f32 %v2917_v53, %v3549_v59  ;;  %v2919_v60 = vpop.eup %2918 }
 0x4a8   :  { %v3595_v18 = vadd.f32 %v1211_v19, %v1210_v3 }
 0x4aa   :  { %2920 = vtanh.f32 %v3595_v18 }
 0x4b4   :  { %v2921_v16 = vpop.eup %2920 }
 0x4b5   :  { %v3598_v42 = vmul.f32 %v2921_v16, %v2919_v60 }
 0x4b7   :  { %1287 = vmatmul.mubr.f32.vlgmr.msra.gmra.mrb[8].mxu0 %v3598_v42  ;;  %1358 = vmatmul.mubr.f32.vlgmr.msra.gmra.mrb[24].mxu1 %v3598_v42 }
 0x4b8   :  { %2562 = vmatpush1.bf16.msra.mxu0 %v3243_v13  ;;  %2594 = vmatpush1.bf16.msra.mxu1 %v3340_v61 }
 0x4b9   :  { %2564 = vmatprep.subr.bf16.mxu0 %v3247_v22  ;;  %2596 = vmatprep.subr.bf16.mxu1 %v3343_v62 }
 0x4ba   :  { %1463 = vmatprep.mubr.f32.mxu0 %v3770_v31  ;;  %1534 = vmatprep.mubr.f32.mxu1 %v3770_v31 }
 0x4bc   :  { %2566 = vmatpush1.bf16.msra.mxu0 %v3249_v26  ;;  %2598 = vmatpush1.bf16.msra.mxu1 %v3350_v7 }
 0x4bd   :  { %2568 = vmatprep.subr.bf16.mxu0 %v3252_v35  ;;  %2600 = vmatprep.subr.bf16.mxu1 %v3353_v8 }
 0x4c0   :  { %2570 = vmatpush1.bf16.msra.mxu0 %v3255_v39  ;;  %2602 = vmatpush1.bf16.msra.mxu1 %v3358_v48 }
 0x4c1   :  { %2572 = vmatprep.subr.bf16.mxu0 %v3258_v44  ;;  %2604 = vmatprep.subr.bf16.mxu1 %v3361_v17 }
 0x4c4   :  { %2574 = vmatpush1.bf16.msra.mxu0 %v3261_v52  ;;  %2606 = vmatpush1.bf16.msra.mxu1 %v3366_v56 }
 0x4c5   :  { %2576 = vmatprep.subr.bf16.mxu0 %v3264_v57  ;;  %2608 = vmatprep.subr.bf16.mxu1 %v3369_v25 }
 0x4c8   :  { %2578 = vmatpush1.bf16.msra.mxu0 %v3267_v1  ;;  %2610 = vmatpush1.bf16.msra.mxu1 %v3374_v2 }
 0x4c9   :  { %2580 = vmatprep.subr.bf16.mxu0 %v3270_v6  ;;  %2612 = vmatprep.subr.bf16.mxu1 %v3377_v33 }
 0x4cc   :  { %2582 = vmatpush1.bf16.msra.mxu0 %v3273_v15  ;;  %2614 = vmatpush1.bf16.msra.mxu1 %v3382_v11 }
 0x4cd   :  { %2584 = vmatprep.subr.bf16.mxu0 %v3276_v20  ;;  %2616 = vmatprep.subr.bf16.mxu1 %v3385_v43 }
 0x4d0   :  { %2586 = vmatpush1.bf16.msra.mxu0 %v3279_v29  ;;  %2618 = vmatpush1.bf16.msra.mxu1 %v3390_v21 }
 0x4d1   :  { %2588 = vmatprep.subr.bf16.mxu0 %v3282_v34  ;;  %2620 = vmatprep.subr.bf16.mxu1 %v3393_v50 }
 0x4d4   :  { %2590 = vmatpush1.bf16.msra.mxu0 %v3285_v41  ;;  %2622 = vmatpush1.bf16.msra.mxu1 %v3398_v58 }
 0x4d5   :  { %2624 = vmatprep.subr.bf16.mxu0 %v3241_v9  ;;  %2656 = vmatprep.subr.bf16.mxu1 %v3334_v54 }
 0x58a   :  { %v1288_v59 = vpop.f32.mrb[8].mxu0  ;;  %v1359_v63 = vpop.f32.mrb[24].mxu1 }
 0x58b   :  { %v1364_v32 = vadd.f32 %v1288_v59, %v3435_v49  ;;  %v1290_v27 = vpop.f32.mrb[9].mxu0  ;;  %v1361_v37 = vpop.f32.mrb[25].mxu1  ;;  %v2823_v47 = vadd.f32 %v1359_v63, %v3451_v5 }
 0x58c   :  { %v1365_v30 = vadd.f32 %v1290_v27, %v3437_v55  ;;  %v2824_v14 = vadd.f32 %v1361_v37, %v3453_v12 }
 0x58d   :  { %v2095_v38 = vmul.f32 -1.442695, %v1364_v32 }
 0x58e   :  { %v2096_v45 = vmul.f32 -1.442695, %v1365_v30  ;;  %v2097_v40 = vmul.f32 -1.442695, %v2824_v14 }
 0x58f   :  { %2922 = vpow2.f32 %v2095_v38 }
 0x590   :  { %2924 = vpow2.f32 %v2096_v45 }
 0x591   :  { %2926 = vpow2.f32 %v2097_v40 }
 0x592   :  { %2928 = vtanh.f32 %v2823_v47 }
 0x599   :  { %v2923_v46 = vpop.eup %2922 }
 0x59a   :  { %v2925_v53 = vpop.eup %2924  ;;  %v1371_v19 = vadd.f32 1.0, %v2923_v46 }
 0x59b   :  { %v1377_v28 = vadd.f32 1.0, %v2925_v53  ;;  %v2927_v49 = vpop.eup %2926 }
 0x59c   :  { %2930 = vrcp.f32 %v1371_v19  ;;  %v2929_v3 = vpop.eup %2928  ;;  %v1384_v59 = vadd.f32 1.0, %v2927_v49 }
 0x59d   :  { %2932 = vrcp.f32 %v1377_v28 }
 0x59e   :  { %2934 = vrcp.f32 %v1384_v59 }
 0x5a6   :  { %v2931_v55 = vpop.eup %2930 }
 0x5a7   :  { %v2933_v60 = vpop.eup %2932  ;;  %v1388_v16 = vmul.f32 %v2931_v55, %v2929_v3 }
 0x5a8   :  { %v1387_v32 = vmul.f32 %v2933_v60, %v3595_v18  ;;  %v2935_v63 = vpop.eup %2934 }
 0x5aa   :  { %v3641_v27 = vadd.f32 %v1388_v16, %v1387_v32 }
 0x5ac   :  { %2936 = vtanh.f32 %v3641_v27 }
 0x5b6   :  { %v2937_v37 = vpop.eup %2936 }
 0x5b7   :  { %v3644_v30 = vmul.f32 %v2937_v37, %v2935_v63 }
 0x5b9   :  { %1464 = vmatmul.mubr.f32.vlgmr.msra.gmra.mrb[10].mxu0 %v3644_v30  ;;  %1535 = vmatmul.mubr.f32.vlgmr.msra.gmra.mrb[26].mxu1 %v3644_v30 }
 0x5ba   :  { %2626 = vmatpush1.bf16.msra.mxu0 %v3243_v13  ;;  %2658 = vmatpush1.bf16.msra.mxu1 %v3340_v61 }
 0x5bb   :  { %2628 = vmatprep.subr.bf16.mxu0 %v3247_v22  ;;  %2660 = vmatprep.subr.bf16.mxu1 %v3343_v62 }
 0x5bc   :  { %1640 = vmatprep.mubr.f32.mxu0 %v3770_v31  ;;  %1711 = vmatprep.mubr.f32.mxu1 %v3770_v31 }
 0x5be   :  { %2630 = vmatpush1.bf16.msra.mxu0 %v3249_v26  ;;  %2662 = vmatpush1.bf16.msra.mxu1 %v3350_v7 }
 0x5bf   :  { %2632 = vmatprep.subr.bf16.mxu0 %v3252_v35  ;;  %2664 = vmatprep.subr.bf16.mxu1 %v3353_v8 }
 0x5c2   :  { %2634 = vmatpush1.bf16.msra.mxu0 %v3255_v39  ;;  %2666 = vmatpush1.bf16.msra.mxu1 %v3358_v48 }
 0x5c3   :  { %2636 = vmatprep.subr.bf16.mxu0 %v3258_v44  ;;  %2668 = vmatprep.subr.bf16.mxu1 %v3361_v17 }
 0x5c6   :  { %2638 = vmatpush1.bf16.msra.mxu0 %v3261_v52  ;;  %2670 = vmatpush1.bf16.msra.mxu1 %v3366_v56 }
 0x5c7   :  { %2640 = vmatprep.subr.bf16.mxu0 %v3264_v57  ;;  %2672 = vmatprep.subr.bf16.mxu1 %v3369_v25 }
 0x5ca   :  { %2642 = vmatpush1.bf16.msra.mxu0 %v3267_v1  ;;  %2674 = vmatpush1.bf16.msra.mxu1 %v3374_v2 }
 0x5cb   :  { %2644 = vmatprep.subr.bf16.mxu0 %v3270_v6  ;;  %2676 = vmatprep.subr.bf16.mxu1 %v3377_v33 }
 0x5ce   :  { %2646 = vmatpush1.bf16.msra.mxu0 %v3273_v15  ;;  %2678 = vmatpush1.bf16.msra.mxu1 %v3382_v11 }
 0x5cf   :  { %2648 = vmatprep.subr.bf16.mxu0 %v3276_v20  ;;  %2680 = vmatprep.subr.bf16.mxu1 %v3385_v43 }
 0x5d2   :  { %2650 = vmatpush1.bf16.msra.mxu0 %v3279_v29  ;;  %2682 = vmatpush1.bf16.msra.mxu1 %v3390_v21 }
 0x5d3   :  { %2652 = vmatprep.subr.bf16.mxu0 %v3282_v34  ;;  %2684 = vmatprep.subr.bf16.mxu1 %v3393_v50 }
 0x5d6   :  { %2654 = vmatpush1.bf16.msra.mxu0 %v3285_v41  ;;  %2686 = vmatpush1.bf16.msra.mxu1 %v3398_v58 }
 0x5d7   :  { %2688 = vmatprep.subr.bf16.mxu0 %v3241_v9  ;;  %2720 = vmatprep.subr.bf16.mxu1 %v3334_v54 }
 0x68c   :  { %v1465_v18 = vpop.f32.mrb[10].mxu0  ;;  %v1536_v38 = vpop.f32.mrb[26].mxu1 }
 0x68d   :  { %v1541_v45 = vadd.f32 %v1465_v18, %v3439_v51  ;;  %v1467_v14 = vpop.f32.mrb[11].mxu0  ;;  %v1538_v40 = vpop.f32.mrb[27].mxu1  ;;  %v2825_v49 = vadd.f32 %v1536_v38, %v3451_v5 }
 0x68e   :  { %v1542_v47 = vadd.f32 %v1467_v14, %v3441_v4  ;;  %v2826_v19 = vadd.f32 %v1538_v40, %v3453_v12  ;;  %v1939_v14 = vld [vmem:[#allocation14 + $0x20] sm:$0xff]  ;;  %v1940_v40 = vld [vmem:[#allocation14 + $0x28] sm:$0xff] }
 0x68f   :  { %v2098_v46 = vmul.f32 -1.442695, %v1541_v45 }
 0x690   :  { %v2099_v53 = vmul.f32 -1.442695, %v1542_v47  ;;  %v2100_v28 = vmul.f32 -1.442695, %v2826_v19  ;;  %v2759_v47 = vpack.c.bf16 %v1940_v40, %v1939_v14 }
 0x691   :  { %2938 = vpow2.f32 %v2098_v46  ;;  %v1941_v46 = vld [vmem:[#allocation14 + $0x30] sm:$0xff] }
 0x692   :  { %2940 = vpow2.f32 %v2099_v53  ;;  %v1942_v53 = vld [vmem:[#allocation14 + $0x38] sm:$0xff] }
 0x693   :  { %2942 = vpow2.f32 %v2100_v28  ;;  %v2763_v19 = vpack.c.bf16 %v1942_v53, %v1941_v46  ;;  %v1943_v28 = vld [vmem:[#allocation14 + $0x40] sm:$0xff] }
 0x694   :  { %2944 = vtanh.f32 %v2825_v49  ;;  %v1944_v49 = vld [vmem:[#allocation14 + $0x48] sm:$0xff] }
 0x69b   :  { %v2939_v9 = vpop.eup %2938 }
 0x69c   :  { %v2941_v3 = vpop.eup %2940  ;;  %v1548_v54 = vadd.f32 1.0, %v2939_v9  ;;  %v2767_v9 = vpack.c.bf16 %v1944_v49, %v1943_v28 }
 0x69d   :  { %v1554_v55 = vadd.f32 1.0, %v2941_v3  ;;  %v2943_v51 = vpop.eup %2942  ;;  %v1945_v3 = vld [vmem:[#allocation14 + $0x50] sm:$0xff] }
 0x69e   :  { %2946 = vrcp.f32 %v1548_v54  ;;  %v2945_v60 = vpop.eup %2944  ;;  %v1561_v32 = vadd.f32 1.0, %v2943_v51  ;;  %v1946_v54 = vld [vmem:[#allocation14 + $0x58] sm:$0xff]  ;;  %v1947_v51 = vld [vmem:[#allocation14 + $0x60] sm:$0xff] }
 0x69f   :  { %2948 = vrcp.f32 %v1554_v55  ;;  %v2771_v55 = vpack.c.bf16 %v1946_v54, %v1945_v3 }
 0x6a0   :  { %2950 = vrcp.f32 %v1561_v32 }
 0x6a8   :  { %v2947_v4 = vpop.eup %2946 }
 0x6a9   :  { %v2949_v16 = vpop.eup %2948  ;;  %v1565_v59 = vmul.f32 %v2947_v4, %v2945_v60  ;;  %v1948_v60 = vld [vmem:[#allocation14 + $0x68] sm:$0xff]  ;;  %v1949_v4 = vld [vmem:[#allocation14 + $0x70] sm:$0xff] }
 0x6aa   :  { %v1564_v63 = vmul.f32 %v2949_v16, %v3641_v27  ;;  %v2951_v18 = vpop.eup %2950  ;;  %v1950_v16 = vld [vmem:[#allocation14 + $0x78] sm:$0xff] }
 0x6ac   :  { %v3687_v37 = vadd.f32 %v1565_v59, %v1564_v63  ;;  %v2779_v59 = vpack.c.bf16 %v1950_v16, %v1949_v4 }
 0x6ae   :  { %2952 = vtanh.f32 %v3687_v37 }
 0x6b8   :  { %v2953_v38 = vpop.eup %2952 }
 0x6b9   :  { %v3690_v45 = vmul.f32 %v2953_v38, %v2951_v18 }
 0x6bb   :  { %1641 = vmatmul.mubr.f32.vlgmr.msra.gmra.mrb[12].mxu0 %v3690_v45  ;;  %1712 = vmatmul.mubr.f32.vlgmr.msra.gmra.mrb[28].mxu1 %v3690_v45 }
 0x6bc   :  { %2690 = vmatpush1.bf16.msra.mxu0 %v3243_v13  ;;  %2722 = vmatpush1.bf16.msra.mxu1 %v3340_v61  ;;  %v1935_v13 = vld [vmem:[#allocation14] sm:$0xff] }
 0x6bd   :  { %2692 = vmatprep.subr.bf16.mxu0 %v3247_v22  ;;  %2724 = vmatprep.subr.bf16.mxu1 %v3343_v62  ;;  %v1936_v22 = vld [vmem:[#allocation14 + $0x8] sm:$0xff] }
 0x6be   :  { %1817 = vmatprep.mubr.f32.mxu0 %v3770_v31  ;;  %1888 = vmatprep.mubr.f32.mxu1 %v3770_v31 }
 0x6c0   :  { %2694 = vmatpush1.bf16.msra.mxu0 %v3249_v26  ;;  %2726 = vmatpush1.bf16.msra.mxu1 %v3350_v7  ;;  %v2751_v26 = vpack.c.bf16 %v1936_v22, %v1935_v13  ;;  %v3772_v13 = vld [vmem:[#allocation21_spill] sm:$0xff] }
 0x6c1   :  { %2696 = vmatprep.subr.bf16.mxu0 %v3252_v35  ;;  %2728 = vmatprep.subr.bf16.mxu1 %v3353_v8 }
 0x6c4   :  { %2698 = vmatpush1.bf16.msra.mxu0 %v3255_v39  ;;  %2730 = vmatpush1.bf16.msra.mxu1 %v3358_v48 }
 0x6c5   :  { %2700 = vmatprep.subr.bf16.mxu0 %v3258_v44  ;;  %2732 = vmatprep.subr.bf16.mxu1 %v3361_v17 }
 0x6c8   :  { %2702 = vmatpush1.bf16.msra.mxu0 %v3261_v52  ;;  %2734 = vmatpush1.bf16.msra.mxu1 %v3366_v56 }
 0x6c9   :  { %2704 = vmatprep.subr.bf16.mxu0 %v3264_v57  ;;  %2736 = vmatprep.subr.bf16.mxu1 %v3369_v25 }
 0x6cc   :  { %2706 = vmatpush1.bf16.msra.mxu0 %v3267_v1  ;;  %2738 = vmatpush1.bf16.msra.mxu1 %v3374_v2  ;;  %v3771_v1 = vld [vmem:[#allocation20_spill] sm:$0xff] }
 0x6cd   :  { %2708 = vmatprep.subr.bf16.mxu0 %v3270_v6  ;;  %2740 = vmatprep.subr.bf16.mxu1 %v3377_v33 }
 0x6d0   :  { %2710 = vmatpush1.bf16.msra.mxu0 %v3273_v15  ;;  %2742 = vmatpush1.bf16.msra.mxu1 %v3382_v11 }
 0x6d1   :  { %2712 = vmatprep.subr.bf16.mxu0 %v3276_v20  ;;  %2744 = vmatprep.subr.bf16.mxu1 %v3385_v43 }
 0x6d4   :  { %2714 = vmatpush1.bf16.msra.mxu0 %v3279_v29  ;;  %2746 = vmatpush1.bf16.msra.mxu1 %v3390_v21  ;;  %v1937_v21 = vld [vmem:[#allocation14 + $0x10] sm:$0xff] }
 0x6d5   :  { %2716 = vmatprep.subr.bf16.mxu0 %v3282_v34  ;;  %2748 = vmatprep.subr.bf16.mxu1 %v3393_v50  ;;  %v1938_v50 = vld [vmem:[#allocation14 + $0x18] sm:$0xff] }
 0x6d6   :  { %v2755_v27 = vpack.c.bf16 %v1938_v50, %v1937_v21 }
 0x6d8   :  { %2718 = vmatpush1.bf16.msra.mxu0 %v3285_v41  ;;  %2750 = vmatpush1.bf16.msra.mxu1 %v3398_v58 }
 0x6d9   :  { %2752 = vmatprep.subr.bf16.mxu0 %v2751_v26 }
 0x78e   :  { %v1642_v35 = vpop.f32.mrb[12].mxu0  ;;  %v1713_v39 = vpop.f32.mrb[28].mxu1 }
 0x78f   :  { %v1718_v44 = vadd.f32 %v1642_v35, %v3443_v10  ;;  %v1644_v52 = vpop.f32.mrb[13].mxu0  ;;  %v1715_v57 = vpop.f32.mrb[29].mxu1  ;;  %v2827_v41 = vadd.f32 %v1713_v39, %v3451_v5 }
 0x790   :  { %v1719_v6 = vadd.f32 %v1644_v52, %v3771_v1  ;;  %v2828_v29 = vadd.f32 %v1715_v57, %v3453_v12 }
 0x791   :  { %v2101_v15 = vmul.f32 -1.442695, %v1718_v44 }
 0x792   :  { %v2102_v20 = vmul.f32 -1.442695, %v1719_v6  ;;  %v2103_v34 = vmul.f32 -1.442695, %v2828_v29 }
 0x793   :  { %2954 = vpow2.f32 %v2101_v15 }
 0x794   :  { %2956 = vpow2.f32 %v2102_v20 }
 0x795   :  { %2958 = vpow2.f32 %v2103_v34 }
 0x796   :  { %2960 = vtanh.f32 %v2827_v41 }
 0x79d   :  { %v2955_v61 = vpop.eup %2954 }
 0x79e   :  { %v2957_v62 = vpop.eup %2956  ;;  %v1725_v7 = vadd.f32 1.0, %v2955_v61 }
 0x79f   :  { %v1731_v8 = vadd.f32 1.0, %v2957_v62  ;;  %v2959_v48 = vpop.eup %2958 }
 0x7a0   :  { %2962 = vrcp.f32 %v1725_v7  ;;  %v2961_v17 = vpop.eup %2960  ;;  %v1738_v33 = vadd.f32 1.0, %v2959_v48 }
 0x7a1   :  { %2964 = vrcp.f32 %v1731_v8 }
 0x7a2   :  { %2966 = vrcp.f32 %v1738_v33 }
 0x7aa   :  { %v2963_v56 = vpop.eup %2962 }
 0x7ab   :  { %v2965_v25 = vpop.eup %2964  ;;  %v1742_v2 = vmul.f32 %v2963_v56, %v2961_v17 }
 0x7ac   :  { %v1741_v11 = vmul.f32 %v2965_v25, %v3687_v37  ;;  %v2967_v58 = vpop.eup %2966 }
 0x7ae   :  { %v3731_v43 = vadd.f32 %v1742_v2, %v1741_v11 }
 0x7b0   :  { %2968 = vtanh.f32 %v3731_v43 }
 0x7ba   :  { %v2969_v10 = vpop.eup %2968 }
 0x7bb   :  { %v1745_v31 = vmul.f32 %v2969_v10, %v2967_v58 }
 0x7bd   :  { %1818 = vmatmul.mubr.f32.vlgmr.msra.gmra.mrb[14].mxu0 %v1745_v31  ;;  %1889 = vmatmul.mubr.f32.vlgmr.msra.gmra.mrb[30].mxu1 %v1745_v31 }
 0x7be   :  { %2754 = vmatpush3.bf16.msra.mxu0 %v2751_v26  ;;  %2163 = vmatprep.mubr.f32.mxu0 %v3460_v0  ;;  %v2775_v0 = vpack.c.bf16 %v1948_v60, %v1947_v51 }
 0x7bf   :  { %2756 = vmatprep.subr.bf16.mxu0 %v2755_v27 }
 0x7c2   :  { %2758 = vmatpush3.bf16.msra.mxu0 %v2755_v27 }
 0x7c3   :  { %2760 = vmatprep.subr.bf16.mxu0 %v2759_v47 }
 0x7c6   :  { %2762 = vmatpush3.bf16.msra.mxu0 %v2759_v47 }
 0x7c7   :  { %2764 = vmatprep.subr.bf16.mxu0 %v2763_v19 }
 0x7ca   :  { %2766 = vmatpush3.bf16.msra.mxu0 %v2763_v19 }
 0x7cb   :  { %2768 = vmatprep.subr.bf16.mxu0 %v2767_v9 }
 0x7ce   :  { %2770 = vmatpush3.bf16.msra.mxu0 %v2767_v9 }
 0x7cf   :  { %2772 = vmatprep.subr.bf16.mxu0 %v2771_v55 }
 0x7d2   :  { %2774 = vmatpush3.bf16.msra.mxu0 %v2771_v55 }
 0x7d3   :  { %2776 = vmatprep.subr.bf16.mxu0 %v2775_v0 }
 0x7d6   :  { %2778 = vmatpush3.bf16.msra.mxu0 %v2775_v0 }
 0x7d7   :  { %2780 = vmatprep.subr.bf16.mxu0 %v2779_v59 }
 0x7da   :  { %2782 = vmatpush3.bf16.msra.mxu0 %v2779_v59 }
 0x7dd   :  { %2164 = vmatmul.mubr.f32.vlgmr.msra.gmra.mrb[16].mxu0 %v3506_v36 }
 0x7de   :  { %2166 = vmatprep.mubr.f32.mxu0 %v3552_v24 }
 0x7e1   :  { %2167 = vmatmul.mubr.f32.gmra.mrb[18].mxu0 %v3598_v42 }
 0x7e2   :  { %2169 = vmatprep.mubr.f32.mxu0 %v3644_v30 }
 0x7e5   :  { %2170 = vmatmul.mubr.f32.gmra.mrb[20].mxu0 %v3690_v45 }
 0x7e6   :  { %2172 = vmatprep.mubr.f32.mxu0 %v1745_v31 }
 0x890   :  { %v1819_v32 = vpop.f32.mrb[14].mxu0  ;;  %v1890_v63 = vpop.f32.mrb[30].mxu1 }
 0x891   :  { %v1895_v37 = vadd.f32 %v1819_v32, %v3447_v23  ;;  %v1821_v18 = vpop.f32.mrb[15].mxu0  ;;  %v1892_v38 = vpop.f32.mrb[31].mxu1  ;;  %v2829_v42 = vadd.f32 %v1890_v63, %v3451_v5 }
 0x892   :  { %v1896_v22 = vadd.f32 %v1821_v18, %v3772_v13  ;;  %v2830_v36 = vadd.f32 %v1892_v38, %v3453_v12 }
 0x893   :  { %v2104_v26 = vmul.f32 -1.442695, %v1895_v37 }
 0x894   :  { %v2105_v35 = vmul.f32 -1.442695, %v1896_v22  ;;  %v2106_v24 = vmul.f32 -1.442695, %v2830_v36 }
 0x895   :  { %2970 = vpow2.f32 %v2104_v26 }
 0x896   :  { %2972 = vpow2.f32 %v2105_v35 }
 0x897   :  { %2974 = vpow2.f32 %v2106_v24 }
 0x898   :  { %2976 = vtanh.f32 %v2829_v42 }
 0x89f   :  { %v2971_v30 = vpop.eup %2970 }
 0x8a0   :  { %v2973_v45 = vpop.eup %2972  ;;  %v1902_v39 = vadd.f32 1.0, %v2971_v30 }
 0x8a1   :  { %v1908_v44 = vadd.f32 1.0, %v2973_v45  ;;  %v2975_v23 = vpop.eup %2974 }
 0x8a2   :  { %2978 = vrcp.f32 %v1902_v39  ;;  %v2977_v52 = vpop.eup %2976  ;;  %v1915_v15 = vadd.f32 1.0, %v2975_v23 }
 0x8a3   :  { %2980 = vrcp.f32 %v1908_v44 }
 0x8a4   :  { %2982 = vrcp.f32 %v1915_v15 }
 0x8ac   :  { %v2979_v57 = vpop.eup %2978 }
 0x8ad   :  { %v2981_v1 = vpop.eup %2980  ;;  %v1919_v6 = vmul.f32 %v2979_v57, %v2977_v52 }
 0x8ae   :  { %v1918_v20 = vmul.f32 %v2981_v1, %v3731_v43  ;;  %v2983_v7 = vpop.eup %2982 }
 0x8b0   :  { %v2165_v12 = vpop.f32.mrb[16].mxu0  ;;  %v1920_v29 = vadd.f32 %v1919_v6, %v1918_v20 }
 0x8b1   :  { %2057 = vst [vmem:[#allocation15 + $0x8] sm:$0xff] %v2165_v12  ;;  %v2017_v5 = vpop.f32.mrb[17].mxu0 }
 0x8b2   :  { %2056 = vst [vmem:[#allocation15] sm:$0xff] %v2017_v5  ;;  %2984 = vtanh.f32 %v1920_v29 }
 0x8b4   :  { %v2168_v34 = vpop.f32.mrb[18].mxu0 }
 0x8b5   :  { %2059 = vst [vmem:[#allocation15 + $0x18] sm:$0xff] %v2168_v34  ;;  %v2027_v41 = vpop.f32.mrb[19].mxu0 }
 0x8b6   :  { %2058 = vst [vmem:[#allocation15 + $0x10] sm:$0xff] %v2027_v41 }
 0x8b8   :  { %v2171_v61 = vpop.f32.mrb[20].mxu0 }
 0x8b9   :  { %2061 = vst [vmem:[#allocation15 + $0x28] sm:$0xff] %v2171_v61  ;;  %v2037_v62 = vpop.f32.mrb[21].mxu0 }
 0x8ba   :  { %2060 = vst [vmem:[#allocation15 + $0x20] sm:$0xff] %v2037_v62 }
 0x8bc   :  { %v2985_v8 = vpop.eup %2984 }
 0x8bd   :  { %v1922_v48 = vmul.f32 %v2985_v8, %v2983_v7 }
 0x8bf   :  { %2173 = vmatmul.mubr.f32.gmra.mrb[22].mxu0 %v1922_v48 }
 0x992   :  { %v2174_v17 = vpop.f32.mrb[22].mxu0 }
 0x993   :  { %2063 = vst [vmem:[#allocation15 + $0x38] sm:$0xff] %v2174_v17  ;;  %v2047_v56 = vpop.f32.mrb[23].mxu0 }
 0x994   :  { %2062 = vst [vmem:[#allocation15 + $0x30] sm:$0xff] %v2047_v56 }
 0x995   :  { %3107 = shalt.err (!%p3104_p2)
}
 0x996   :  { %s3108_s9 = scalar_lea.hbm %s3765_s5, 1024 }
 0x997   :  { %p3109_p3 = scmp.ne.s32.totalorder %s3765_s5, %s3108_s9  ;;  %p3112_p4 = scmp.lt.u32.totalorder %s3108_s9, %s3765_s5 }
 0x999   :  { %p3114_p5 = pnand %p3112_p4, %p3109_p3 }
 0x99b   :  { %3117 = shalt.err (!%p3114_p5)
}
 0x99c   :  { %2075 = dma.vmem_to_hbm [thread:$0]  %s2070_s29, 1024, %s3765_s5, [#allocation8], %s3131_s3, %s3131_s3, %s3132_s30  }
 0x99d   :  { %3124 = dma.done.wait [#allocation8], 1024  }
 0x99e   :  { %3125 = vsyncadd [#allocation8], 4294966272 }
 0x99f   :  { %2079 = vsyncpa [#allocation7], 1 }
 0x9a0   :  { %2080 = vsyncpa [#allocation10], 1 }
 0x9a1   :  { %2081 = vsyncpa [#allocation13], 1 }
 0x9a2   :  { %2082 = vsyncpa [#allocation8], 1 }

</bundles_post_ra>
